<compile_context>
chip_gen: v7x
topology: tpu7x:2x2x1
jax: 0.10.0
libtpu: 0.0.40
codegen_flags: <defaults>
</compile_context>

<pallas_src>
import jax
import jax.numpy as jnp
from jax import lax
from jax.experimental import pallas as pl
from jax.experimental.pallas import tpu as pltpu


# --------------------------------------------------------------------------- #
# Shared in-kernel math for one batch pair.
#   xcat : [D, 2N] f32  (pair concatenated along the lane/sample axis)
#   x1,x2: [D,  N] f32  (same data, used for the per-batch Pearson matrices)
# Returns (mmd, corr) as (1, 1) f32 arrays.
# --------------------------------------------------------------------------- #
def _mmd_corr_pair(bw, xcat, x1, x2):
    d, n = x1.shape
    two_n = xcat.shape[1]
    inv_n = 1.0 / n

    # ---- Gaussian-kernel MMD^2: single fused [2N, 2N] Gram, bw folded in ----
    xs = xcat * jnp.sqrt(bw)                                    # [D, 2N]
    sq_row = jnp.sum(xs * xs, axis=0, keepdims=True)            # [1, 2N]
    sq_col = jnp.transpose(sq_row)                               # [2N, 1]
    g = lax.dot_general(xs, xs, dimension_numbers=(((0,), (0,)), ((), ())),
                        preferred_element_type=jnp.float32)     # [2N, 2N] on MXU
    # k(a,b) = exp(-bw*||a-b||^2) = exp(min(2<a,b> - |a|^2 - |b|^2, 0)) on scaled data.
    k = jnp.exp(jnp.minimum(2.0 * g - sq_col - sq_row, 0.0))    # [2N, 2N]

    # +/-1 block weights: +1 inside K11/K22 quadrants, -1 in the cross quadrants.
    lane_ids = lax.broadcasted_iota(jnp.int32, (1, two_n), 1)
    sub_ids = lax.broadcasted_iota(jnp.int32, (two_n, 1), 0)
    s_row = jnp.where(lane_ids < n, jnp.float32(1.0), jnp.float32(-1.0))
    s_col = jnp.where(sub_ids < n, jnp.float32(1.0), jnp.float32(-1.0))
    w = k * s_row * s_col
    mmd = jnp.sum(jnp.sum(w, axis=1, keepdims=True), axis=0,
                  keepdims=True) * (inv_n * inv_n)               # (1, 1)

    # ---- CorrD: mean L1 distance between Pearson correlation matrices ----
    def _pearson(x):
        mu = jnp.sum(x, axis=1, keepdims=True) * inv_n           # [D, 1]
        xc = x - mu
        cov = lax.dot_general(xc, xc, dimension_numbers=(((1,), (1,)), ((), ())),
                              preferred_element_type=jnp.float32) * inv_n   # [D, D]
        var = jnp.sum(xc * xc, axis=1, keepdims=True) * inv_n    # [D, 1]
        inv_std = lax.rsqrt(var + 1e-12)                          # EUP slot
        return cov * inv_std * jnp.transpose(inv_std)

    c1m = _pearson(x1)
    c2m = _pearson(x2)
    adiff = jnp.abs(c1m - c2m)
    corr = jnp.sum(jnp.sum(adiff, axis=1, keepdims=True), axis=0,
                   keepdims=True) * (1.0 / (d * d))               # (1, 1)
    return mmd, corr


# --------------------------------------------------------------------------- #
# Fused forward kernel: one launch, both scalars out.
# --------------------------------------------------------------------------- #
def _diff_fwd_kernel(bw_ref, xcat_ref, x1_ref, x2_ref, mmd_ref, corr_ref):
    bw = bw_ref[0, 0]
    mmd, corr = _mmd_corr_pair(bw,
                               xcat_ref[...].astype(jnp.float32),
                               x1_ref[...].astype(jnp.float32),
                               x2_ref[...].astype(jnp.float32))
    mmd_ref[...] = mmd
    corr_ref[...] = corr


@jax.jit
def _diff_forward(d1, d2, bandwidth, calib1, calib2):
    x1 = jnp.transpose(d1).astype(jnp.float32)               # [D, N]
    x2 = jnp.transpose(d2).astype(jnp.float32)               # [D, N]
    xcat = jnp.concatenate([x1, x2], axis=1)                  # [D, 2N]  (lane-dense)
    bw = jnp.asarray(bandwidth, jnp.float32).reshape(1, 1)
    mmd, corr = pl.pallas_call(
        _diff_fwd_kernel,
        out_shape=(jax.ShapeDtypeStruct((1, 1), jnp.float32),
                   jax.ShapeDtypeStruct((1, 1), jnp.float32)),
        in_specs=[
            pl.BlockSpec(memory_space=pltpu.MemorySpace.SMEM),   # bandwidth scalar
            pl.BlockSpec(memory_space=pltpu.MemorySpace.VMEM),   # [d1^T | d2^T]
            pl.BlockSpec(memory_space=pltpu.MemorySpace.VMEM),   # d1^T
            pl.BlockSpec(memory_space=pltpu.MemorySpace.VMEM),   # d2^T
        ],
        out_specs=(pl.BlockSpec(memory_space=pltpu.MemorySpace.VMEM),
                   pl.BlockSpec(memory_space=pltpu.MemorySpace.VMEM)),
    )(bw, xcat, x1, x2)
    distance1 = mmd[0, 0] / calib1
    distance2 = corr[0, 0] / calib2
    return distance1, distance2, jnp.abs(distance1 - distance2)


# --------------------------------------------------------------------------- #
# Batched calibration kernel: Kb pairs per grid step, per-step partial sums out.
# --------------------------------------------------------------------------- #
def _calib_kernel(bw_ref, xcat_ref, x1_ref, x2_ref, mmd_ref, corr_ref):
    bw = bw_ref[0, 0]
    kb = xcat_ref.shape[0]                     # static block size
    mmd_acc = jnp.zeros((1, 1), jnp.float32)
    corr_acc = jnp.zeros((1, 1), jnp.float32)
    for i in range(kb):                        # static trip count -> unrolled at trace
        mmd, corr = _mmd_corr_pair(bw,
                                   xcat_ref[i].astype(jnp.float32),
                                   x1_ref[i].astype(jnp.float32),
                                   x2_ref[i].astype(jnp.float32))
        mmd_acc = mmd_acc + mmd
        corr_acc = corr_acc + corr
    # Single write per grid step; each step owns its own output block -> "parallel".
    mmd_ref[0] = mmd_acc
    corr_ref[0] = corr_acc


@jax.jit
def _calib_batched(c1, c2, bandwidth):
    # c1, c2: [B, N, D] stacked calibration mini-batch pairs.
    B, N, D = c1.shape
    kb = min(8, B)                              # pairs per grid step (static)
    steps = -(-B // kb)                         # ceil(B / kb)
    pad = steps * kb - B

    x1 = jnp.transpose(c1, (0, 2, 1)).astype(jnp.float32)   # [B, D, N]
    x2 = jnp.transpose(c2, (0, 2, 1)).astype(jnp.float32)
    if pad:
        # Zero pairs contribute exactly 0 to both MMD and CorrD sums (verified).
        z = jnp.zeros((pad, D, N), jnp.float32)
        x1 = jnp.concatenate([x1, z], axis=0)
        x2 = jnp.concatenate([x2, z], axis=0)
    xcat = jnp.concatenate([x1, x2], axis=2)                 # [B', D, 2N]
    bw = jnp.asarray(bandwidth, jnp.float32).reshape(1, 1)

    mmd_p, corr_p = pl.pallas_call(
        _calib_kernel,
        out_shape=(jax.ShapeDtypeStruct((steps, 1, 1), jnp.float32),
                   jax.ShapeDtypeStruct((steps, 1, 1), jnp.float32)),
        grid=(steps,),
        in_specs=[
            pl.BlockSpec(memory_space=pltpu.MemorySpace.SMEM),          # bandwidth
            pl.BlockSpec((kb, D, 2 * N), lambda b: (b, 0, 0)),          # pair concat
            pl.BlockSpec((kb, D, N), lambda b: (b, 0, 0)),              # batch 1
            pl.BlockSpec((kb, D, N), lambda b: (b, 0, 0)),              # batch 2
        ],
        out_specs=(pl.BlockSpec((1, 1, 1), lambda b: (b, 0, 0)),        # per-step partials
                   pl.BlockSpec((1, 1, 1), lambda b: (b, 0, 0))),
        compiler_params=pltpu.CompilerParams(
            dimension_semantics=("parallel",)),   # independent steps -> megacore on v7x
    )(bw, xcat, x1, x2)
    # Final mean in XLA (divide by the real B, padding contributed 0).
    return jnp.sum(mmd_p) / B, jnp.sum(corr_p) / B


# --------------------------------------------------------------------------- #
# diff_block equivalent
# --------------------------------------------------------------------------- #
class DiffBlock:
    def __init__(self, bandwidth, sampling_rate=6, corr_types=(1, 1)):
        # nn.Parameter(th.Tensor([bandwidth]).reshape((1, 1)))
        self.bandwidth = jnp.full((1, 1), bandwidth, dtype=jnp.float32)
        self.sampling_rate = sampling_rate
        self.corr_types = corr_types
        self.calib1 = jnp.float32(1.0)
        self.calib2 = jnp.float32(1.0)

    def calib_computer(self, calib_dataset, batch_size, num_run=1):
        # Deterministic stand-in for shuffled DataLoaders over a CSV dataset.
        key = jax.random.PRNGKey(123)
        n = calib_dataset.shape[0]
        nb = n // batch_size
        c1_parts, c2_parts = [], []
        for _ in range(num_run):
            key, k1, k2 = jax.random.split(key, 3)
            p1 = jax.random.permutation(k1, n)[: nb * batch_size]
            p2 = jax.random.permutation(k2, n)[: nb * batch_size]
            c1_parts.append(calib_dataset[p1].reshape(nb, batch_size, -1))
            c2_parts.append(calib_dataset[p2].reshape(nb, batch_size, -1))
        c1_all = jnp.concatenate(c1_parts, axis=0)   # [nb*num_run, N, D]
        c2_all = jnp.concatenate(c2_parts, axis=0)
        self.calib1, self.calib2 = _calib_batched(c1_all, c2_all, self.bandwidth)
        return self.calib1, self.calib2

    def forward(self, d1, d2):
        return _diff_forward(d1, d2, self.bandwidth, self.calib1, self.calib2)


if __name__ == "__main__":
    key = jax.random.PRNGKey(0)
    k1, k2, k3 = jax.random.split(key, 3)

    N, D = 64, 8
    d1 = jax.random.normal(k1, (N, D), dtype=jnp.float32)
    d2 = jax.random.normal(k2, (N, D), dtype=jnp.float32) * 1.5 + 0.3
    calib = jax.random.normal(k3, (4 * N, D), dtype=jnp.float32)

    blk = DiffBlock(bandwidth=1.0, sampling_rate=6, corr_types=(1, 1))
    blk.calib_computer(calib, batch_size=N, num_run=1)

    dist1, dist2, diff = blk.forward(d1, d2)
    jax.block_until_ready((dist1, dist2, diff))
    print("KERNEL_OK")
</pallas_src>

<mosaic_0001>
module attributes {stable_mosaic.version = 11 : i64} {
  func.func @_calib_kernel(%arg0: i32, %arg1: memref<1x1xf32, #tpu.memory_space<smem>>, %arg2: memref<4x8x128xf32, #tpu.memory_space<vmem>>, %arg3: memref<4x8x64xf32, #tpu.memory_space<vmem>>, %arg4: memref<4x8x64xf32, #tpu.memory_space<vmem>>, %arg5: memref<1x1x1xf32, #tpu.memory_space<vmem>>, %arg6: memref<1x1x1xf32, #tpu.memory_space<vmem>>) attributes {dimension_semantics = [#tpu.dimension_semantics<parallel>], iteration_bounds = array<i64: 1>, scalar_prefetch = 0 : i64, scratch_operands = 0 : i64, tpu.core_type = #tpu.core_type<tc>, window_params = [{transform_indices = @transform_0, window_bounds = array<i64: 1, 1>}, {transform_indices = @transform_1, window_bounds = array<i64: 4, 8, 128>}, {transform_indices = @transform_2, window_bounds = array<i64: 4, 8, 64>}, {transform_indices = @transform_3, window_bounds = array<i64: 4, 8, 64>}, {transform_indices = @transform_4, window_bounds = array<i64: 1, 1, 1>}, {transform_indices = @transform_5, window_bounds = array<i64: 1, 1, 1>}]} {
    %c0 = arith.constant 0 : index
    %c0_0 = arith.constant 0 : index
    %0 = memref.load %arg1[%c0, %c0_0] : memref<1x1xf32, #tpu.memory_space<smem>>
    %cst = arith.constant 0.000000e+00 : f32
    %1 = vector.broadcast %cst : f32 to vector<1x1xf32>
    %cst_1 = arith.constant 0.000000e+00 : f32
    %2 = vector.broadcast %cst_1 : f32 to vector<1x1xf32>
    %c0_2 = arith.constant 0 : index
    %c0_3 = arith.constant 0 : index
    %c0_4 = arith.constant 0 : index
    %3 = vector.load %arg2[%c0_2, %c0_3, %c0_4] : memref<4x8x128xf32, #tpu.memory_space<vmem>>, vector<1x8x128xf32>
    %4 = vector.shape_cast %3 : vector<1x8x128xf32> to vector<8x128xf32>
    %c0_5 = arith.constant 0 : index
    %c0_6 = arith.constant 0 : index
    %c0_7 = arith.constant 0 : index
    %5 = vector.load %arg3[%c0_5, %c0_6, %c0_7] : memref<4x8x64xf32, #tpu.memory_space<vmem>>, vector<1x8x64xf32>
    %6 = vector.shape_cast %5 : vector<1x8x64xf32> to vector<8x64xf32>
    %c0_8 = arith.constant 0 : index
    %c0_9 = arith.constant 0 : index
    %c0_10 = arith.constant 0 : index
    %7 = vector.load %arg4[%c0_8, %c0_9, %c0_10] : memref<4x8x64xf32, #tpu.memory_space<vmem>>, vector<1x8x64xf32>
    %8 = vector.shape_cast %7 : vector<1x8x64xf32> to vector<8x64xf32>
    %9 = math.sqrt %0 : f32
    %10 = vector.broadcast %9 : f32 to vector<8x128xf32>
    %11 = arith.mulf %4, %10 : vector<8x128xf32>
    %12 = arith.mulf %11, %11 : vector<8x128xf32>
    %cst_11 = arith.constant dense<0.000000e+00> : vector<128xf32>
    %13 = vector.multi_reduction <add>, %12, %cst_11 [0] : vector<8x128xf32> to vector<128xf32>
    %14 = vector.shape_cast %13 : vector<128xf32> to vector<1x128xf32>
    %15 = tpu.transpose %14, [1, 0] : vector<1x128xf32> -> vector<128x1xf32>
    %cst_12 = arith.constant dense<0.000000e+00> : vector<128x128xf32>
    %16 = tpu.matmul %11, %11, %cst_12 {dimension_numbers = #tpu.dot_dimension_numbers<[0], [0], [1], [1], [0, 1, 1, 1], [], []>} : vector<8x128xf32>, vector<8x128xf32>, vector<128x128xf32> -> vector<128x128xf32>
    %cst_13 = arith.constant 2.000000e+00 : f32
    %17 = vector.broadcast %cst_13 : f32 to vector<128x128xf32>
    %18 = arith.mulf %17, %16 : vector<128x128xf32>
    %19 = vector.broadcast %15 : vector<128x1xf32> to vector<128x128xf32>
    %20 = arith.subf %18, %19 : vector<128x128xf32>
    %21 = vector.broadcast %14 : vector<1x128xf32> to vector<128x128xf32>
    %22 = arith.subf %20, %21 : vector<128x128xf32>
    %cst_14 = arith.constant 0.000000e+00 : f32
    %23 = vector.broadcast %cst_14 : f32 to vector<128x128xf32>
    %24 = arith.minimumf %22, %23 : vector<128x128xf32>
    %25 = math.exp %24 : vector<128x128xf32>
    %26 = tpu.iota {dimensions = array<i32: 1>} : vector<1x128xi32>
    %27 = tpu.iota {dimensions = array<i32: 0>} : vector<128x1xi32>
    %c64_i32 = arith.constant 64 : i32
    %28 = vector.broadcast %c64_i32 : i32 to vector<1x128xi32>
    %29 = arith.cmpi slt, %26, %28 : vector<1x128xi32>
    %cst_15 = arith.constant 1.000000e+00 : f32
    %cst_16 = arith.constant -1.000000e+00 : f32
    %30 = vector.broadcast %cst_15 : f32 to vector<1x128xf32>
    %31 = vector.broadcast %cst_16 : f32 to vector<1x128xf32>
    %32 = arith.select %29, %30, %31 : vector<1x128xi1>, vector<1x128xf32>
    %c64_i32_17 = arith.constant 64 : i32
    %33 = vector.broadcast %c64_i32_17 : i32 to vector<128x1xi32>
    %34 = arith.cmpi slt, %27, %33 : vector<128x1xi32>
    %cst_18 = arith.constant 1.000000e+00 : f32
    %cst_19 = arith.constant -1.000000e+00 : f32
    %35 = vector.broadcast %cst_18 : f32 to vector<128x1xf32>
    %36 = vector.broadcast %cst_19 : f32 to vector<128x1xf32>
    %37 = arith.select %34, %35, %36 : vector<128x1xi1>, vector<128x1xf32>
    %38 = vector.broadcast %32 : vector<1x128xf32> to vector<128x128xf32>
    %39 = arith.mulf %25, %38 : vector<128x128xf32>
    %40 = vector.broadcast %37 : vector<128x1xf32> to vector<128x128xf32>
    %41 = arith.mulf %39, %40 : vector<128x128xf32>
    %cst_20 = arith.constant dense<0.000000e+00> : vector<128xf32>
    %42 = vector.multi_reduction <add>, %41, %cst_20 [1] : vector<128x128xf32> to vector<128xf32>
    %43 = vector.shape_cast %42 : vector<128xf32> to vector<128x1xf32>
    %cst_21 = arith.constant dense<0.000000e+00> : vector<1xf32>
    %44 = vector.multi_reduction <add>, %43, %cst_21 [0] : vector<128x1xf32> to vector<1xf32>
    %45 = vector.shape_cast %44 : vector<1xf32> to vector<1x1xf32>
    %cst_22 = arith.constant 2.44140625E-4 : f32
    %46 = vector.broadcast %cst_22 : f32 to vector<1x1xf32>
    %47 = arith.mulf %45, %46 : vector<1x1xf32>
    %cst_23 = arith.constant dense<0.000000e+00> : vector<8xf32>
    %48 = vector.multi_reduction <add>, %6, %cst_23 [1] : vector<8x64xf32> to vector<8xf32>
    %49 = vector.shape_cast %48 : vector<8xf32> to vector<8x1xf32>
    %cst_24 = arith.constant 1.562500e-02 : f32
    %50 = vector.broadcast %cst_24 : f32 to vector<8x1xf32>
    %51 = arith.mulf %49, %50 : vector<8x1xf32>
    %52 = vector.broadcast %51 : vector<8x1xf32> to vector<8x64xf32>
    %53 = arith.subf %6, %52 : vector<8x64xf32>
    %cst_25 = arith.constant dense<0.000000e+00> : vector<8x8xf32>
    %54 = tpu.matmul %53, %53, %cst_25 {dimension_numbers = #tpu.dot_dimension_numbers<[1], [1], [0], [0], [0, 0, 1, 0], [], []>} : vector<8x64xf32>, vector<8x64xf32>, vector<8x8xf32> -> vector<8x8xf32>
    %cst_26 = arith.constant 1.562500e-02 : f32
    %55 = vector.broadcast %cst_26 : f32 to vector<8x8xf32>
    %56 = arith.mulf %54, %55 : vector<8x8xf32>
    %57 = arith.mulf %53, %53 : vector<8x64xf32>
    %cst_27 = arith.constant dense<0.000000e+00> : vector<8xf32>
    %58 = vector.multi_reduction <add>, %57, %cst_27 [1] : vector<8x64xf32> to vector<8xf32>
    %59 = vector.shape_cast %58 : vector<8xf32> to vector<8x1xf32>
    %cst_28 = arith.constant 1.562500e-02 : f32
    %60 = vector.broadcast %cst_28 : f32 to vector<8x1xf32>
    %61 = arith.mulf %59, %60 : vector<8x1xf32>
    %cst_29 = arith.constant 9.99999996E-13 : f32
    %62 = vector.broadcast %cst_29 : f32 to vector<8x1xf32>
    %63 = arith.addf %61, %62 : vector<8x1xf32>
    %64 = math.rsqrt %63 : vector<8x1xf32>
    %65 = vector.broadcast %64 : vector<8x1xf32> to vector<8x8xf32>
    %66 = arith.mulf %56, %65 : vector<8x8xf32>
    %67 = tpu.transpose %64, [1, 0] : vector<8x1xf32> -> vector<1x8xf32>
    %68 = vector.broadcast %67 : vector<1x8xf32> to vector<8x8xf32>
    %69 = arith.mulf %66, %68 : vector<8x8xf32>
    %cst_30 = arith.constant dense<0.000000e+00> : vector<8xf32>
    %70 = vector.multi_reduction <add>, %8, %cst_30 [1] : vector<8x64xf32> to vector<8xf32>
    %71 = vector.shape_cast %70 : vector<8xf32> to vector<8x1xf32>
    %cst_31 = arith.constant 1.562500e-02 : f32
    %72 = vector.broadcast %cst_31 : f32 to vector<8x1xf32>
    %73 = arith.mulf %71, %72 : vector<8x1xf32>
    %74 = vector.broadcast %73 : vector<8x1xf32> to vector<8x64xf32>
    %75 = arith.subf %8, %74 : vector<8x64xf32>
    %cst_32 = arith.constant dense<0.000000e+00> : vector<8x8xf32>
    %76 = tpu.matmul %75, %75, %cst_32 {dimension_numbers = #tpu.dot_dimension_numbers<[1], [1], [0], [0], [0, 0, 1, 0], [], []>} : vector<8x64xf32>, vector<8x64xf32>, vector<8x8xf32> -> vector<8x8xf32>
    %cst_33 = arith.constant 1.562500e-02 : f32
    %77 = vector.broadcast %cst_33 : f32 to vector<8x8xf32>
    %78 = arith.mulf %76, %77 : vector<8x8xf32>
    %79 = arith.mulf %75, %75 : vector<8x64xf32>
    %cst_34 = arith.constant dense<0.000000e+00> : vector<8xf32>
    %80 = vector.multi_reduction <add>, %79, %cst_34 [1] : vector<8x64xf32> to vector<8xf32>
    %81 = vector.shape_cast %80 : vector<8xf32> to vector<8x1xf32>
    %cst_35 = arith.constant 1.562500e-02 : f32
    %82 = vector.broadcast %cst_35 : f32 to vector<8x1xf32>
    %83 = arith.mulf %81, %82 : vector<8x1xf32>
    %cst_36 = arith.constant 9.99999996E-13 : f32
    %84 = vector.broadcast %cst_36 : f32 to vector<8x1xf32>
    %85 = arith.addf %83, %84 : vector<8x1xf32>
    %86 = math.rsqrt %85 : vector<8x1xf32>
    %87 = vector.broadcast %86 : vector<8x1xf32> to vector<8x8xf32>
    %88 = arith.mulf %78, %87 : vector<8x8xf32>
    %89 = tpu.transpose %86, [1, 0] : vector<8x1xf32> -> vector<1x8xf32>
    %90 = vector.broadcast %89 : vector<1x8xf32> to vector<8x8xf32>
    %91 = arith.mulf %88, %90 : vector<8x8xf32>
    %92 = arith.subf %69, %91 : vector<8x8xf32>
    %93 = math.absf %92 : vector<8x8xf32>
    %cst_37 = arith.constant dense<0.000000e+00> : vector<8xf32>
    %94 = vector.multi_reduction <add>, %93, %cst_37 [1] : vector<8x8xf32> to vector<8xf32>
    %95 = vector.shape_cast %94 : vector<8xf32> to vector<8x1xf32>
    %cst_38 = arith.constant dense<0.000000e+00> : vector<1xf32>
    %96 = vector.multi_reduction <add>, %95, %cst_38 [0] : vector<8x1xf32> to vector<1xf32>
    %97 = vector.shape_cast %96 : vector<1xf32> to vector<1x1xf32>
    %cst_39 = arith.constant 1.562500e-02 : f32
    %98 = vector.broadcast %cst_39 : f32 to vector<1x1xf32>
    %99 = arith.mulf %97, %98 : vector<1x1xf32>
    %100 = arith.addf %1, %47 : vector<1x1xf32>
    %101 = arith.addf %2, %99 : vector<1x1xf32>
    %c1 = arith.constant 1 : index
    %c0_40 = arith.constant 0 : index
    %c0_41 = arith.constant 0 : index
    %102 = vector.load %arg2[%c1, %c0_40, %c0_41] : memref<4x8x128xf32, #tpu.memory_space<vmem>>, vector<1x8x128xf32>
    %103 = vector.shape_cast %102 : vector<1x8x128xf32> to vector<8x128xf32>
    %c1_42 = arith.constant 1 : index
    %c0_43 = arith.constant 0 : index
    %c0_44 = arith.constant 0 : index
    %104 = vector.load %arg3[%c1_42, %c0_43, %c0_44] : memref<4x8x64xf32, #tpu.memory_space<vmem>>, vector<1x8x64xf32>
    %105 = vector.shape_cast %104 : vector<1x8x64xf32> to vector<8x64xf32>
    %c1_45 = arith.constant 1 : index
    %c0_46 = arith.constant 0 : index
    %c0_47 = arith.constant 0 : index
    %106 = vector.load %arg4[%c1_45, %c0_46, %c0_47] : memref<4x8x64xf32, #tpu.memory_space<vmem>>, vector<1x8x64xf32>
    %107 = vector.shape_cast %106 : vector<1x8x64xf32> to vector<8x64xf32>
    %108 = math.sqrt %0 : f32
    %109 = vector.broadcast %108 : f32 to vector<8x128xf32>
    %110 = arith.mulf %103, %109 : vector<8x128xf32>
    %111 = arith.mulf %110, %110 : vector<8x128xf32>
    %cst_48 = arith.constant dense<0.000000e+00> : vector<128xf32>
    %112 = vector.multi_reduction <add>, %111, %cst_48 [0] : vector<8x128xf32> to vector<128xf32>
    %113 = vector.shape_cast %112 : vector<128xf32> to vector<1x128xf32>
    %114 = tpu.transpose %113, [1, 0] : vector<1x128xf32> -> vector<128x1xf32>
    %cst_49 = arith.constant dense<0.000000e+00> : vector<128x128xf32>
    %115 = tpu.matmul %110, %110, %cst_49 {dimension_numbers = #tpu.dot_dimension_numbers<[0], [0], [1], [1], [0, 1, 1, 1], [], []>} : vector<8x128xf32>, vector<8x128xf32>, vector<128x128xf32> -> vector<128x128xf32>
    %cst_50 = arith.constant 2.000000e+00 : f32
    %116 = vector.broadcast %cst_50 : f32 to vector<128x128xf32>
    %117 = arith.mulf %116, %115 : vector<128x128xf32>
    %118 = vector.broadcast %114 : vector<128x1xf32> to vector<128x128xf32>
    %119 = arith.subf %117, %118 : vector<128x128xf32>
    %120 = vector.broadcast %113 : vector<1x128xf32> to vector<128x128xf32>
    %121 = arith.subf %119, %120 : vector<128x128xf32>
    %cst_51 = arith.constant 0.000000e+00 : f32
    %122 = vector.broadcast %cst_51 : f32 to vector<128x128xf32>
    %123 = arith.minimumf %121, %122 : vector<128x128xf32>
    %124 = math.exp %123 : vector<128x128xf32>
    %125 = tpu.iota {dimensions = array<i32: 1>} : vector<1x128xi32>
    %126 = tpu.iota {dimensions = array<i32: 0>} : vector<128x1xi32>
    %c64_i32_52 = arith.constant 64 : i32
    %127 = vector.broadcast %c64_i32_52 : i32 to vector<1x128xi32>
    %128 = arith.cmpi slt, %125, %127 : vector<1x128xi32>
    %cst_53 = arith.constant 1.000000e+00 : f32
    %cst_54 = arith.constant -1.000000e+00 : f32
    %129 = vector.broadcast %cst_53 : f32 to vector<1x128xf32>
    %130 = vector.broadcast %cst_54 : f32 to vector<1x128xf32>
    %131 = arith.select %128, %129, %130 : vector<1x128xi1>, vector<1x128xf32>
    %c64_i32_55 = arith.constant 64 : i32
    %132 = vector.broadcast %c64_i32_55 : i32 to vector<128x1xi32>
    %133 = arith.cmpi slt, %126, %132 : vector<128x1xi32>
    %cst_56 = arith.constant 1.000000e+00 : f32
    %cst_57 = arith.constant -1.000000e+00 : f32
    %134 = vector.broadcast %cst_56 : f32 to vector<128x1xf32>
    %135 = vector.broadcast %cst_57 : f32 to vector<128x1xf32>
    %136 = arith.select %133, %134, %135 : vector<128x1xi1>, vector<128x1xf32>
    %137 = vector.broadcast %131 : vector<1x128xf32> to vector<128x128xf32>
    %138 = arith.mulf %124, %137 : vector<128x128xf32>
    %139 = vector.broadcast %136 : vector<128x1xf32> to vector<128x128xf32>
    %140 = arith.mulf %138, %139 : vector<128x128xf32>
    %cst_58 = arith.constant dense<0.000000e+00> : vector<128xf32>
    %141 = vector.multi_reduction <add>, %140, %cst_58 [1] : vector<128x128xf32> to vector<128xf32>
    %142 = vector.shape_cast %141 : vector<128xf32> to vector<128x1xf32>
    %cst_59 = arith.constant dense<0.000000e+00> : vector<1xf32>
    %143 = vector.multi_reduction <add>, %142, %cst_59 [0] : vector<128x1xf32> to vector<1xf32>
    %144 = vector.shape_cast %143 : vector<1xf32> to vector<1x1xf32>
    %cst_60 = arith.constant 2.44140625E-4 : f32
    %145 = vector.broadcast %cst_60 : f32 to vector<1x1xf32>
    %146 = arith.mulf %144, %145 : vector<1x1xf32>
    %cst_61 = arith.constant dense<0.000000e+00> : vector<8xf32>
    %147 = vector.multi_reduction <add>, %105, %cst_61 [1] : vector<8x64xf32> to vector<8xf32>
    %148 = vector.shape_cast %147 : vector<8xf32> to vector<8x1xf32>
    %cst_62 = arith.constant 1.562500e-02 : f32
    %149 = vector.broadcast %cst_62 : f32 to vector<8x1xf32>
    %150 = arith.mulf %148, %149 : vector<8x1xf32>
    %151 = vector.broadcast %150 : vector<8x1xf32> to vector<8x64xf32>
    %152 = arith.subf %105, %151 : vector<8x64xf32>
    %cst_63 = arith.constant dense<0.000000e+00> : vector<8x8xf32>
    %153 = tpu.matmul %152, %152, %cst_63 {dimension_numbers = #tpu.dot_dimension_numbers<[1], [1], [0], [0], [0, 0, 1, 0], [], []>} : vector<8x64xf32>, vector<8x64xf32>, vector<8x8xf32> -> vector<8x8xf32>
    %cst_64 = arith.constant 1.562500e-02 : f32
    %154 = vector.broadcast %cst_64 : f32 to vector<8x8xf32>
    %155 = arith.mulf %153, %154 : vector<8x8xf32>
    %156 = arith.mulf %152, %152 : vector<8x64xf32>
    %cst_65 = arith.constant dense<0.000000e+00> : vector<8xf32>
    %157 = vector.multi_reduction <add>, %156, %cst_65 [1] : vector<8x64xf32> to vector<8xf32>
    %158 = vector.shape_cast %157 : vector<8xf32> to vector<8x1xf32>
    %cst_66 = arith.constant 1.562500e-02 : f32
    %159 = vector.broadcast %cst_66 : f32 to vector<8x1xf32>
    %160 = arith.mulf %158, %159 : vector<8x1xf32>
    %cst_67 = arith.constant 9.99999996E-13 : f32
    %161 = vector.broadcast %cst_67 : f32 to vector<8x1xf32>
    %162 = arith.addf %160, %161 : vector<8x1xf32>
    %163 = math.rsqrt %162 : vector<8x1xf32>
    %164 = vector.broadcast %163 : vector<8x1xf32> to vector<8x8xf32>
    %165 = arith.mulf %155, %164 : vector<8x8xf32>
    %166 = tpu.transpose %163, [1, 0] : vector<8x1xf32> -> vector<1x8xf32>
    %167 = vector.broadcast %166 : vector<1x8xf32> to vector<8x8xf32>
    %168 = arith.mulf %165, %167 : vector<8x8xf32>
    %cst_68 = arith.constant dense<0.000000e+00> : vector<8xf32>
    %169 = vector.multi_reduction <add>, %107, %cst_68 [1] : vector<8x64xf32> to vector<8xf32>
    %170 = vector.shape_cast %169 : vector<8xf32> to vector<8x1xf32>
    %cst_69 = arith.constant 1.562500e-02 : f32
    %171 = vector.broadcast %cst_69 : f32 to vector<8x1xf32>
    %172 = arith.mulf %170, %171 : vector<8x1xf32>
    %173 = vector.broadcast %172 : vector<8x1xf32> to vector<8x64xf32>
    %174 = arith.subf %107, %173 : vector<8x64xf32>
    %cst_70 = arith.constant dense<0.000000e+00> : vector<8x8xf32>
    %175 = tpu.matmul %174, %174, %cst_70 {dimension_numbers = #tpu.dot_dimension_numbers<[1], [1], [0], [0], [0, 0, 1, 0], [], []>} : vector<8x64xf32>, vector<8x64xf32>, vector<8x8xf32> -> vector<8x8xf32>
    %cst_71 = arith.constant 1.562500e-02 : f32
    %176 = vector.broadcast %cst_71 : f32 to vector<8x8xf32>
    %177 = arith.mulf %175, %176 : vector<8x8xf32>
    %178 = arith.mulf %174, %174 : vector<8x64xf32>
    %cst_72 = arith.constant dense<0.000000e+00> : vector<8xf32>
    %179 = vector.multi_reduction <add>, %178, %cst_72 [1] : vector<8x64xf32> to vector<8xf32>
    %180 = vector.shape_cast %179 : vector<8xf32> to vector<8x1xf32>
    %cst_73 = arith.constant 1.562500e-02 : f32
    %181 = vector.broadcast %cst_73 : f32 to vector<8x1xf32>
    %182 = arith.mulf %180, %181 : vector<8x1xf32>
    %cst_74 = arith.constant 9.99999996E-13 : f32
    %183 = vector.broadcast %cst_74 : f32 to vector<8x1xf32>
    %184 = arith.addf %182, %183 : vector<8x1xf32>
    %185 = math.rsqrt %184 : vector<8x1xf32>
    %186 = vector.broadcast %185 : vector<8x1xf32> to vector<8x8xf32>
    %187 = arith.mulf %177, %186 : vector<8x8xf32>
    %188 = tpu.transpose %185, [1, 0] : vector<8x1xf32> -> vector<1x8xf32>
    %189 = vector.broadcast %188 : vector<1x8xf32> to vector<8x8xf32>
    %190 = arith.mulf %187, %189 : vector<8x8xf32>
    %191 = arith.subf %168, %190 : vector<8x8xf32>
    %192 = math.absf %191 : vector<8x8xf32>
    %cst_75 = arith.constant dense<0.000000e+00> : vector<8xf32>
    %193 = vector.multi_reduction <add>, %192, %cst_75 [1] : vector<8x8xf32> to vector<8xf32>
    %194 = vector.shape_cast %193 : vector<8xf32> to vector<8x1xf32>
    %cst_76 = arith.constant dense<0.000000e+00> : vector<1xf32>
    %195 = vector.multi_reduction <add>, %194, %cst_76 [0] : vector<8x1xf32> to vector<1xf32>
    %196 = vector.shape_cast %195 : vector<1xf32> to vector<1x1xf32>
    %cst_77 = arith.constant 1.562500e-02 : f32
    %197 = vector.broadcast %cst_77 : f32 to vector<1x1xf32>
    %198 = arith.mulf %196, %197 : vector<1x1xf32>
    %199 = arith.addf %100, %146 : vector<1x1xf32>
    %200 = arith.addf %101, %198 : vector<1x1xf32>
    %c2 = arith.constant 2 : index
    %c0_78 = arith.constant 0 : index
    %c0_79 = arith.constant 0 : index
    %201 = vector.load %arg2[%c2, %c0_78, %c0_79] : memref<4x8x128xf32, #tpu.memory_space<vmem>>, vector<1x8x128xf32>
    %202 = vector.shape_cast %201 : vector<1x8x128xf32> to vector<8x128xf32>
    %c2_80 = arith.constant 2 : index
    %c0_81 = arith.constant 0 : index
    %c0_82 = arith.constant 0 : index
    %203 = vector.load %arg3[%c2_80, %c0_81, %c0_82] : memref<4x8x64xf32, #tpu.memory_space<vmem>>, vector<1x8x64xf32>
    %204 = vector.shape_cast %203 : vector<1x8x64xf32> to vector<8x64xf32>
    %c2_83 = arith.constant 2 : index
    %c0_84 = arith.constant 0 : index
    %c0_85 = arith.constant 0 : index
    %205 = vector.load %arg4[%c2_83, %c0_84, %c0_85] : memref<4x8x64xf32, #tpu.memory_space<vmem>>, vector<1x8x64xf32>
    %206 = vector.shape_cast %205 : vector<1x8x64xf32> to vector<8x64xf32>
    %207 = math.sqrt %0 : f32
    %208 = vector.broadcast %207 : f32 to vector<8x128xf32>
    %209 = arith.mulf %202, %208 : vector<8x128xf32>
    %210 = arith.mulf %209, %209 : vector<8x128xf32>
    %cst_86 = arith.constant dense<0.000000e+00> : vector<128xf32>
    %211 = vector.multi_reduction <add>, %210, %cst_86 [0] : vector<8x128xf32> to vector<128xf32>
    %212 = vector.shape_cast %211 : vector<128xf32> to vector<1x128xf32>
    %213 = tpu.transpose %212, [1, 0] : vector<1x128xf32> -> vector<128x1xf32>
    %cst_87 = arith.constant dense<0.000000e+00> : vector<128x128xf32>
    %214 = tpu.matmul %209, %209, %cst_87 {dimension_numbers = #tpu.dot_dimension_numbers<[0], [0], [1], [1], [0, 1, 1, 1], [], []>} : vector<8x128xf32>, vector<8x128xf32>, vector<128x128xf32> -> vector<128x128xf32>
    %cst_88 = arith.constant 2.000000e+00 : f32
    %215 = vector.broadcast %cst_88 : f32 to vector<128x128xf32>
    %216 = arith.mulf %215, %214 : vector<128x128xf32>
    %217 = vector.broadcast %213 : vector<128x1xf32> to vector<128x128xf32>
    %218 = arith.subf %216, %217 : vector<128x128xf32>
    %219 = vector.broadcast %212 : vector<1x128xf32> to vector<128x128xf32>
    %220 = arith.subf %218, %219 : vector<128x128xf32>
    %cst_89 = arith.constant 0.000000e+00 : f32
    %221 = vector.broadcast %cst_89 : f32 to vector<128x128xf32>
    %222 = arith.minimumf %220, %221 : vector<128x128xf32>
    %223 = math.exp %222 : vector<128x128xf32>
    %224 = tpu.iota {dimensions = array<i32: 1>} : vector<1x128xi32>
    %225 = tpu.iota {dimensions = array<i32: 0>} : vector<128x1xi32>
    %c64_i32_90 = arith.constant 64 : i32
    %226 = vector.broadcast %c64_i32_90 : i32 to vector<1x128xi32>
    %227 = arith.cmpi slt, %224, %226 : vector<1x128xi32>
    %cst_91 = arith.constant 1.000000e+00 : f32
    %cst_92 = arith.constant -1.000000e+00 : f32
    %228 = vector.broadcast %cst_91 : f32 to vector<1x128xf32>
    %229 = vector.broadcast %cst_92 : f32 to vector<1x128xf32>
    %230 = arith.select %227, %228, %229 : vector<1x128xi1>, vector<1x128xf32>
    %c64_i32_93 = arith.constant 64 : i32
    %231 = vector.broadcast %c64_i32_93 : i32 to vector<128x1xi32>
    %232 = arith.cmpi slt, %225, %231 : vector<128x1xi32>
    %cst_94 = arith.constant 1.000000e+00 : f32
    %cst_95 = arith.constant -1.000000e+00 : f32
    %233 = vector.broadcast %cst_94 : f32 to vector<128x1xf32>
    %234 = vector.broadcast %cst_95 : f32 to vector<128x1xf32>
    %235 = arith.select %232, %233, %234 : vector<128x1xi1>, vector<128x1xf32>
    %236 = vector.broadcast %230 : vector<1x128xf32> to vector<128x128xf32>
    %237 = arith.mulf %223, %236 : vector<128x128xf32>
    %238 = vector.broadcast %235 : vector<128x1xf32> to vector<128x128xf32>
    %239 = arith.mulf %237, %238 : vector<128x128xf32>
    %cst_96 = arith.constant dense<0.000000e+00> : vector<128xf32>
    %240 = vector.multi_reduction <add>, %239, %cst_96 [1] : vector<128x128xf32> to vector<128xf32>
    %241 = vector.shape_cast %240 : vector<128xf32> to vector<128x1xf32>
    %cst_97 = arith.constant dense<0.000000e+00> : vector<1xf32>
    %242 = vector.multi_reduction <add>, %241, %cst_97 [0] : vector<128x1xf32> to vector<1xf32>
    %243 = vector.shape_cast %242 : vector<1xf32> to vector<1x1xf32>
    %cst_98 = arith.constant 2.44140625E-4 : f32
    %244 = vector.broadcast %cst_98 : f32 to vector<1x1xf32>
    %245 = arith.mulf %243, %244 : vector<1x1xf32>
    %cst_99 = arith.constant dense<0.000000e+00> : vector<8xf32>
    %246 = vector.multi_reduction <add>, %204, %cst_99 [1] : vector<8x64xf32> to vector<8xf32>
    %247 = vector.shape_cast %246 : vector<8xf32> to vector<8x1xf32>
    %cst_100 = arith.constant 1.562500e-02 : f32
    %248 = vector.broadcast %cst_100 : f32 to vector<8x1xf32>
    %249 = arith.mulf %247, %248 : vector<8x1xf32>
    %250 = vector.broadcast %249 : vector<8x1xf32> to vector<8x64xf32>
    %251 = arith.subf %204, %250 : vector<8x64xf32>
    %cst_101 = arith.constant dense<0.000000e+00> : vector<8x8xf32>
    %252 = tpu.matmul %251, %251, %cst_101 {dimension_numbers = #tpu.dot_dimension_numbers<[1], [1], [0], [0], [0, 0, 1, 0], [], []>} : vector<8x64xf32>, vector<8x64xf32>, vector<8x8xf32> -> vector<8x8xf32>
    %cst_102 = arith.constant 1.562500e-02 : f32
    %253 = vector.broadcast %cst_102 : f32 to vector<8x8xf32>
    %254 = arith.mulf %252, %253 : vector<8x8xf32>
    %255 = arith.mulf %251, %251 : vector<8x64xf32>
    %cst_103 = arith.constant dense<0.000000e+00> : vector<8xf32>
    %256 = vector.multi_reduction <add>, %255, %cst_103 [1] : vector<8x64xf32> to vector<8xf32>
    %257 = vector.shape_cast %256 : vector<8xf32> to vector<8x1xf32>
    %cst_104 = arith.constant 1.562500e-02 : f32
    %258 = vector.broadcast %cst_104 : f32 to vector<8x1xf32>
    %259 = arith.mulf %257, %258 : vector<8x1xf32>
    %cst_105 = arith.constant 9.99999996E-13 : f32
    %260 = vector.broadcast %cst_105 : f32 to vector<8x1xf32>
    %261 = arith.addf %259, %260 : vector<8x1xf32>
    %262 = math.rsqrt %261 : vector<8x1xf32>
    %263 = vector.broadcast %262 : vector<8x1xf32> to vector<8x8xf32>
    %264 = arith.mulf %254, %263 : vector<8x8xf32>
    %265 = tpu.transpose %262, [1, 0] : vector<8x1xf32> -> vector<1x8xf32>
    %266 = vector.broadcast %265 : vector<1x8xf32> to vector<8x8xf32>
    %267 = arith.mulf %264, %266 : vector<8x8xf32>
    %cst_106 = arith.constant dense<0.000000e+00> : vector<8xf32>
    %268 = vector.multi_reduction <add>, %206, %cst_106 [1] : vector<8x64xf32> to vector<8xf32>
    %269 = vector.shape_cast %268 : vector<8xf32> to vector<8x1xf32>
    %cst_107 = arith.constant 1.562500e-02 : f32
    %270 = vector.broadcast %cst_107 : f32 to vector<8x1xf32>
    %271 = arith.mulf %269, %270 : vector<8x1xf32>
    %272 = vector.broadcast %271 : vector<8x1xf32> to vector<8x64xf32>
    %273 = arith.subf %206, %272 : vector<8x64xf32>
    %cst_108 = arith.constant dense<0.000000e+00> : vector<8x8xf32>
    %274 = tpu.matmul %273, %273, %cst_108 {dimension_numbers = #tpu.dot_dimension_numbers<[1], [1], [0], [0], [0, 0, 1, 0], [], []>} : vector<8x64xf32>, vector<8x64xf32>, vector<8x8xf32> -> vector<8x8xf32>
    %cst_109 = arith.constant 1.562500e-02 : f32
    %275 = vector.broadcast %cst_109 : f32 to vector<8x8xf32>
    %276 = arith.mulf %274, %275 : vector<8x8xf32>
    %277 = arith.mulf %273, %273 : vector<8x64xf32>
    %cst_110 = arith.constant dense<0.000000e+00> : vector<8xf32>
    %278 = vector.multi_reduction <add>, %277, %cst_110 [1] : vector<8x64xf32> to vector<8xf32>
    %279 = vector.shape_cast %278 : vector<8xf32> to vector<8x1xf32>
    %cst_111 = arith.constant 1.562500e-02 : f32
    %280 = vector.broadcast %cst_111 : f32 to vector<8x1xf32>
    %281 = arith.mulf %279, %280 : vector<8x1xf32>
    %cst_112 = arith.constant 9.99999996E-13 : f32
    %282 = vector.broadcast %cst_112 : f32 to vector<8x1xf32>
    %283 = arith.addf %281, %282 : vector<8x1xf32>
    %284 = math.rsqrt %283 : vector<8x1xf32>
    %285 = vector.broadcast %284 : vector<8x1xf32> to vector<8x8xf32>
    %286 = arith.mulf %276, %285 : vector<8x8xf32>
    %287 = tpu.transpose %284, [1, 0] : vector<8x1xf32> -> vector<1x8xf32>
    %288 = vector.broadcast %287 : vector<1x8xf32> to vector<8x8xf32>
    %289 = arith.mulf %286, %288 : vector<8x8xf32>
    %290 = arith.subf %267, %289 : vector<8x8xf32>
    %291 = math.absf %290 : vector<8x8xf32>
    %cst_113 = arith.constant dense<0.000000e+00> : vector<8xf32>
    %292 = vector.multi_reduction <add>, %291, %cst_113 [1] : vector<8x8xf32> to vector<8xf32>
    %293 = vector.shape_cast %292 : vector<8xf32> to vector<8x1xf32>
    %cst_114 = arith.constant dense<0.000000e+00> : vector<1xf32>
    %294 = vector.multi_reduction <add>, %293, %cst_114 [0] : vector<8x1xf32> to vector<1xf32>
    %295 = vector.shape_cast %294 : vector<1xf32> to vector<1x1xf32>
    %cst_115 = arith.constant 1.562500e-02 : f32
    %296 = vector.broadcast %cst_115 : f32 to vector<1x1xf32>
    %297 = arith.mulf %295, %296 : vector<1x1xf32>
    %298 = arith.addf %199, %245 : vector<1x1xf32>
    %299 = arith.addf %200, %297 : vector<1x1xf32>
    %c3 = arith.constant 3 : index
    %c0_116 = arith.constant 0 : index
    %c0_117 = arith.constant 0 : index
    %300 = vector.load %arg2[%c3, %c0_116, %c0_117] : memref<4x8x128xf32, #tpu.memory_space<vmem>>, vector<1x8x128xf32>
    %301 = vector.shape_cast %300 : vector<1x8x128xf32> to vector<8x128xf32>
    %c3_118 = arith.constant 3 : index
    %c0_119 = arith.constant 0 : index
    %c0_120 = arith.constant 0 : index
    %302 = vector.load %arg3[%c3_118, %c0_119, %c0_120] : memref<4x8x64xf32, #tpu.memory_space<vmem>>, vector<1x8x64xf32>
    %303 = vector.shape_cast %302 : vector<1x8x64xf32> to vector<8x64xf32>
    %c3_121 = arith.constant 3 : index
    %c0_122 = arith.constant 0 : index
    %c0_123 = arith.constant 0 : index
    %304 = vector.load %arg4[%c3_121, %c0_122, %c0_123] : memref<4x8x64xf32, #tpu.memory_space<vmem>>, vector<1x8x64xf32>
    %305 = vector.shape_cast %304 : vector<1x8x64xf32> to vector<8x64xf32>
    %306 = math.sqrt %0 : f32
    %307 = vector.broadcast %306 : f32 to vector<8x128xf32>
    %308 = arith.mulf %301, %307 : vector<8x128xf32>
    %309 = arith.mulf %308, %308 : vector<8x128xf32>
    %cst_124 = arith.constant dense<0.000000e+00> : vector<128xf32>
    %310 = vector.multi_reduction <add>, %309, %cst_124 [0] : vector<8x128xf32> to vector<128xf32>
    %311 = vector.shape_cast %310 : vector<128xf32> to vector<1x128xf32>
    %312 = tpu.transpose %311, [1, 0] : vector<1x128xf32> -> vector<128x1xf32>
    %cst_125 = arith.constant dense<0.000000e+00> : vector<128x128xf32>
    %313 = tpu.matmul %308, %308, %cst_125 {dimension_numbers = #tpu.dot_dimension_numbers<[0], [0], [1], [1], [0, 1, 1, 1], [], []>} : vector<8x128xf32>, vector<8x128xf32>, vector<128x128xf32> -> vector<128x128xf32>
    %cst_126 = arith.constant 2.000000e+00 : f32
    %314 = vector.broadcast %cst_126 : f32 to vector<128x128xf32>
    %315 = arith.mulf %314, %313 : vector<128x128xf32>
    %316 = vector.broadcast %312 : vector<128x1xf32> to vector<128x128xf32>
    %317 = arith.subf %315, %316 : vector<128x128xf32>
    %318 = vector.broadcast %311 : vector<1x128xf32> to vector<128x128xf32>
    %319 = arith.subf %317, %318 : vector<128x128xf32>
    %cst_127 = arith.constant 0.000000e+00 : f32
    %320 = vector.broadcast %cst_127 : f32 to vector<128x128xf32>
    %321 = arith.minimumf %319, %320 : vector<128x128xf32>
    %322 = math.exp %321 : vector<128x128xf32>
    %323 = tpu.iota {dimensions = array<i32: 1>} : vector<1x128xi32>
    %324 = tpu.iota {dimensions = array<i32: 0>} : vector<128x1xi32>
    %c64_i32_128 = arith.constant 64 : i32
    %325 = vector.broadcast %c64_i32_128 : i32 to vector<1x128xi32>
    %326 = arith.cmpi slt, %323, %325 : vector<1x128xi32>
    %cst_129 = arith.constant 1.000000e+00 : f32
    %cst_130 = arith.constant -1.000000e+00 : f32
    %327 = vector.broadcast %cst_129 : f32 to vector<1x128xf32>
    %328 = vector.broadcast %cst_130 : f32 to vector<1x128xf32>
    %329 = arith.select %326, %327, %328 : vector<1x128xi1>, vector<1x128xf32>
    %c64_i32_131 = arith.constant 64 : i32
    %330 = vector.broadcast %c64_i32_131 : i32 to vector<128x1xi32>
    %331 = arith.cmpi slt, %324, %330 : vector<128x1xi32>
    %cst_132 = arith.constant 1.000000e+00 : f32
    %cst_133 = arith.constant -1.000000e+00 : f32
    %332 = vector.broadcast %cst_132 : f32 to vector<128x1xf32>
    %333 = vector.broadcast %cst_133 : f32 to vector<128x1xf32>
    %334 = arith.select %331, %332, %333 : vector<128x1xi1>, vector<128x1xf32>
    %335 = vector.broadcast %329 : vector<1x128xf32> to vector<128x128xf32>
    %336 = arith.mulf %322, %335 : vector<128x128xf32>
    %337 = vector.broadcast %334 : vector<128x1xf32> to vector<128x128xf32>
    %338 = arith.mulf %336, %337 : vector<128x128xf32>
    %cst_134 = arith.constant dense<0.000000e+00> : vector<128xf32>
    %339 = vector.multi_reduction <add>, %338, %cst_134 [1] : vector<128x128xf32> to vector<128xf32>
    %340 = vector.shape_cast %339 : vector<128xf32> to vector<128x1xf32>
    %cst_135 = arith.constant dense<0.000000e+00> : vector<1xf32>
    %341 = vector.multi_reduction <add>, %340, %cst_135 [0] : vector<128x1xf32> to vector<1xf32>
    %342 = vector.shape_cast %341 : vector<1xf32> to vector<1x1xf32>
    %cst_136 = arith.constant 2.44140625E-4 : f32
    %343 = vector.broadcast %cst_136 : f32 to vector<1x1xf32>
    %344 = arith.mulf %342, %343 : vector<1x1xf32>
    %cst_137 = arith.constant dense<0.000000e+00> : vector<8xf32>
    %345 = vector.multi_reduction <add>, %303, %cst_137 [1] : vector<8x64xf32> to vector<8xf32>
    %346 = vector.shape_cast %345 : vector<8xf32> to vector<8x1xf32>
    %cst_138 = arith.constant 1.562500e-02 : f32
    %347 = vector.broadcast %cst_138 : f32 to vector<8x1xf32>
    %348 = arith.mulf %346, %347 : vector<8x1xf32>
    %349 = vector.broadcast %348 : vector<8x1xf32> to vector<8x64xf32>
    %350 = arith.subf %303, %349 : vector<8x64xf32>
    %cst_139 = arith.constant dense<0.000000e+00> : vector<8x8xf32>
    %351 = tpu.matmul %350, %350, %cst_139 {dimension_numbers = #tpu.dot_dimension_numbers<[1], [1], [0], [0], [0, 0, 1, 0], [], []>} : vector<8x64xf32>, vector<8x64xf32>, vector<8x8xf32> -> vector<8x8xf32>
    %cst_140 = arith.constant 1.562500e-02 : f32
    %352 = vector.broadcast %cst_140 : f32 to vector<8x8xf32>
    %353 = arith.mulf %351, %352 : vector<8x8xf32>
    %354 = arith.mulf %350, %350 : vector<8x64xf32>
    %cst_141 = arith.constant dense<0.000000e+00> : vector<8xf32>
    %355 = vector.multi_reduction <add>, %354, %cst_141 [1] : vector<8x64xf32> to vector<8xf32>
    %356 = vector.shape_cast %355 : vector<8xf32> to vector<8x1xf32>
    %cst_142 = arith.constant 1.562500e-02 : f32
    %357 = vector.broadcast %cst_142 : f32 to vector<8x1xf32>
    %358 = arith.mulf %356, %357 : vector<8x1xf32>
    %cst_143 = arith.constant 9.99999996E-13 : f32
    %359 = vector.broadcast %cst_143 : f32 to vector<8x1xf32>
    %360 = arith.addf %358, %359 : vector<8x1xf32>
    %361 = math.rsqrt %360 : vector<8x1xf32>
    %362 = vector.broadcast %361 : vector<8x1xf32> to vector<8x8xf32>
    %363 = arith.mulf %353, %362 : vector<8x8xf32>
    %364 = tpu.transpose %361, [1, 0] : vector<8x1xf32> -> vector<1x8xf32>
    %365 = vector.broadcast %364 : vector<1x8xf32> to vector<8x8xf32>
    %366 = arith.mulf %363, %365 : vector<8x8xf32>
    %cst_144 = arith.constant dense<0.000000e+00> : vector<8xf32>
    %367 = vector.multi_reduction <add>, %305, %cst_144 [1] : vector<8x64xf32> to vector<8xf32>
    %368 = vector.shape_cast %367 : vector<8xf32> to vector<8x1xf32>
    %cst_145 = arith.constant 1.562500e-02 : f32
    %369 = vector.broadcast %cst_145 : f32 to vector<8x1xf32>
    %370 = arith.mulf %368, %369 : vector<8x1xf32>
    %371 = vector.broadcast %370 : vector<8x1xf32> to vector<8x64xf32>
    %372 = arith.subf %305, %371 : vector<8x64xf32>
    %cst_146 = arith.constant dense<0.000000e+00> : vector<8x8xf32>
    %373 = tpu.matmul %372, %372, %cst_146 {dimension_numbers = #tpu.dot_dimension_numbers<[1], [1], [0], [0], [0, 0, 1, 0], [], []>} : vector<8x64xf32>, vector<8x64xf32>, vector<8x8xf32> -> vector<8x8xf32>
    %cst_147 = arith.constant 1.562500e-02 : f32
    %374 = vector.broadcast %cst_147 : f32 to vector<8x8xf32>
    %375 = arith.mulf %373, %374 : vector<8x8xf32>
    %376 = arith.mulf %372, %372 : vector<8x64xf32>
    %cst_148 = arith.constant dense<0.000000e+00> : vector<8xf32>
    %377 = vector.multi_reduction <add>, %376, %cst_148 [1] : vector<8x64xf32> to vector<8xf32>
    %378 = vector.shape_cast %377 : vector<8xf32> to vector<8x1xf32>
    %cst_149 = arith.constant 1.562500e-02 : f32
    %379 = vector.broadcast %cst_149 : f32 to vector<8x1xf32>
    %380 = arith.mulf %378, %379 : vector<8x1xf32>
    %cst_150 = arith.constant 9.99999996E-13 : f32
    %381 = vector.broadcast %cst_150 : f32 to vector<8x1xf32>
    %382 = arith.addf %380, %381 : vector<8x1xf32>
    %383 = math.rsqrt %382 : vector<8x1xf32>
    %384 = vector.broadcast %383 : vector<8x1xf32> to vector<8x8xf32>
    %385 = arith.mulf %375, %384 : vector<8x8xf32>
    %386 = tpu.transpose %383, [1, 0] : vector<8x1xf32> -> vector<1x8xf32>
    %387 = vector.broadcast %386 : vector<1x8xf32> to vector<8x8xf32>
    %388 = arith.mulf %385, %387 : vector<8x8xf32>
    %389 = arith.subf %366, %388 : vector<8x8xf32>
    %390 = math.absf %389 : vector<8x8xf32>
    %cst_151 = arith.constant dense<0.000000e+00> : vector<8xf32>
    %391 = vector.multi_reduction <add>, %390, %cst_151 [1] : vector<8x8xf32> to vector<8xf32>
    %392 = vector.shape_cast %391 : vector<8xf32> to vector<8x1xf32>
    %cst_152 = arith.constant dense<0.000000e+00> : vector<1xf32>
    %393 = vector.multi_reduction <add>, %392, %cst_152 [0] : vector<8x1xf32> to vector<1xf32>
    %394 = vector.shape_cast %393 : vector<1xf32> to vector<1x1xf32>
    %cst_153 = arith.constant 1.562500e-02 : f32
    %395 = vector.broadcast %cst_153 : f32 to vector<1x1xf32>
    %396 = arith.mulf %394, %395 : vector<1x1xf32>
    %397 = arith.addf %298, %344 : vector<1x1xf32>
    %398 = arith.addf %299, %396 : vector<1x1xf32>
    %c0_154 = arith.constant 0 : index
    %c0_155 = arith.constant 0 : index
    %c0_156 = arith.constant 0 : index
    %399 = vector.load %arg5[%c0_154, %c0_155, %c0_156] : memref<1x1x1xf32, #tpu.memory_space<vmem>>, vector<1x1x1xf32>
    %400 = vector.shape_cast %399 : vector<1x1x1xf32> to vector<1x1xf32>
    %401 = vector.shape_cast %397 : vector<1x1xf32> to vector<1x1x1xf32>
    tpu.vector_store %arg5[%c0_154, %c0_155, %c0_156], %401 {strides = array<i32>} : memref<1x1x1xf32, #tpu.memory_space<vmem>>, vector<1x1x1xf32>,
    %c0_157 = arith.constant 0 : index
    %c0_158 = arith.constant 0 : index
    %c0_159 = arith.constant 0 : index
    %402 = vector.load %arg6[%c0_157, %c0_158, %c0_159] : memref<1x1x1xf32, #tpu.memory_space<vmem>>, vector<1x1x1xf32>
    %403 = vector.shape_cast %402 : vector<1x1x1xf32> to vector<1x1xf32>
    %404 = vector.shape_cast %398 : vector<1x1xf32> to vector<1x1x1xf32>
    tpu.vector_store %arg6[%c0_157, %c0_158, %c0_159], %404 {strides = array<i32>} : memref<1x1x1xf32, #tpu.memory_space<vmem>>, vector<1x1x1xf32>,
    return
  }
  func.func @transform_0(%arg0: i32) -> (i32, i32) {
    %c0_i32 = arith.constant 0 : i32
    %c0_i32_0 = arith.constant 0 : i32
    %c0_i32_1 = arith.constant 0 : i32
    return %c0_i32, %c0_i32_0 : i32, i32
  }
  func.func @transform_1(%arg0: i32) -> (i32, i32, i32) {
    %c0_i32 = arith.constant 0 : i32
    %c0_i32_0 = arith.constant 0 : i32
    %c0_i32_1 = arith.constant 0 : i32
    return %arg0, %c0_i32, %c0_i32_0 : i32, i32, i32
  }
  func.func @transform_2(%arg0: i32) -> (i32, i32, i32) {
    %c0_i32 = arith.constant 0 : i32
    %c0_i32_0 = arith.constant 0 : i32
    %c0_i32_1 = arith.constant 0 : i32
    return %arg0, %c0_i32, %c0_i32_0 : i32, i32, i32
  }
  func.func @transform_3(%arg0: i32) -> (i32, i32, i32) {
    %c0_i32 = arith.constant 0 : i32
    %c0_i32_0 = arith.constant 0 : i32
    %c0_i32_1 = arith.constant 0 : i32
    return %arg0, %c0_i32, %c0_i32_0 : i32, i32, i32
  }
  func.func @transform_4(%arg0: i32) -> (i32, i32, i32) {
    %c0_i32 = arith.constant 0 : i32
    %c0_i32_0 = arith.constant 0 : i32
    %c0_i32_1 = arith.constant 0 : i32
    return %arg0, %c0_i32, %c0_i32_0 : i32, i32, i32
  }
  func.func @transform_5(%arg0: i32) -> (i32, i32, i32) {
    %c0_i32 = arith.constant 0 : i32
    %c0_i32_0 = arith.constant 0 : i32
    %c0_i32_1 = arith.constant 0 : i32
    return %arg0, %c0_i32, %c0_i32_0 : i32, i32, i32
  }
}

</mosaic_0001>

<bundles_post_ra>
// kernel: _calib_batched.1
= control target key start
LH: loop header
LB: loop body
LE: loop exit
PB: predicated region body
PF: predicated region fallthrough
CT: control target
= control target key end

     0   :  { %12 = vsyncpa [#allocation4], 0  ;;  %vm617_vm0 = vcmask 523264   ;;  %s4494_s0 = inlined_call_operand.<no memory space> [shape: f32[1,1], index: 0, kind: input, shape index: {}]   ;;  %s4495_s1 = inlined_call_operand.vmem [shape: f32[4,8,128], index: 1, kind: input, shape index: {}]   ;;  %s4496_s2 = inlined_call_operand.vmem [shape: f32[4,8,64], index: 2, kind: input, shape index: {}]   ;;  %s4497_s3 = inlined_call_operand.vmem [shape: f32[4,8,64], index: 3, kind: input, shape index: {}]   ;;  %s4498_s4 = inlined_call_operand.hbm [shape: f32[1,1,1], index: 4, kind: output, shape index: {0}]   ;;  %s4499_s5 = inlined_call_operand.hbm [shape: f32[1,1,1], index: 5, kind: output, shape index: {1}]  }
   0x1   :  { %v26_v0 = vstv %s4494_s0  ;;  %v24_v1 = vld [vmem:[%s4496_s2] sm:$0xff] }
   0x2   :  { %3623 = vrsqrt.f32 %v26_v0  ;;  %v618_v2 = vsel %vm617_vm0, %v24_v1, 0.0 }
   0x3   :  { %13 = vsyncpa [#allocation6], 0  ;;  %619 = vadd.xlane.f32.xlu1 %v618_v2  ;;  %vm29_vm1 = vcmp.eq.f32.partialorder %v26_v0, inf  ;;  %v32_v4 = vand.u32 2147483648, %v26_v0  ;;  %vm31_vm2 = vcmp.eq.f32.partialorder %v26_v0, 0.0  ;;  %v23_v8 = vld [vmem:[%s4495_s1] sm:$0xff] }
   0x4   :  { %v3316_v23 = vld [vmem:[%s4495_s1 + $0x8] sm:$0xff]  ;;  %v3817_v24 = vmov 0   ;;  %vm108_vm3 = vcmask 64512   ;;  %vm3819_vm4 = vmmov 0   ;;  %vm3265_vm6 = vcmask 0  }
   0x5   :  { %3621 = vset.pattern.permute.xlu1 %v3817_v24 }
   0xc   :  { %v3624_v3 = vpop.eup %3623 }
   0xd   :  { %v28_v5 = vmul.f32 %v3624_v3, %v26_v0 }
   0xf   :  { %v30_v6 = vsel %vm29_vm1, %v26_v0, %v28_v5 }
  0x10   :  { %v33_v7 = vsel %vm31_vm2, %v32_v4, %v30_v6 }
  0x11   :  { %3613 = vpush %v33_v7  ;;  %v4500_v7 = vmov 0.0  }
  0x12   :  { %3495 = vmatprep.subr.mxu1 %v4500_v7  ;;  %3497 = vmatprep.mubr.msk.f32.mxu1 %vm3819_vm4, %v4500_v7 }
  0x42   :  { %s3614_s23 = spop %3613 }
  0x43   :  { %v3863_v9 = vstv %s3614_s23 }
  0x44   :  { %4505 = vst [vmem:[#allocation9_spill] sm:$0xff] %v3863_v9  ;;  %v36_v10 = vmul.f32 %v3863_v9, %v23_v8  ;;  %v3879_v25 = vmul.f32 %v3316_v23, %v3863_v9  ;;  %v4509_v9 = vlaneseq }
  0x46   :  { %76 = vxpose.xlu0.b32.start.end [1/1] (short) %v36_v10, 128  ;;  %3469 = vmatprep.subr.mxu0 %v36_v10  ;;  %v37_v11 = vmul.f32 %v36_v10, %v36_v10  ;;  %v887_v26 = vmul.f32 %v3879_v25, %v3879_v25 }
  0x47   :  { %3470 = vmatpush3.msra.mxu0 %v36_v10  ;;  %v3921_v10 = vld [vmem:[%s4497_s3] sm:$0xff] }
  0x48   :  { %v38_v12 = vrot.slane %v37_v11, 4  ;;  %v888_v27 = vrot.slane %v887_v26, 4  ;;  %3531 = vmatprep.subr.mxu0 %v4500_v7 }
  0x4a   :  { %v39_v13 = vadd.f32 %v38_v12, %v37_v11  ;;  %v889_v28 = vadd.f32 %v888_v27, %v887_v26  ;;  %v742_v12 = vsel %vm617_vm0, %v3921_v10, 0.0 }
  0x4c   :  { %v40_v14 = vrot.slane %v39_v13, 2  ;;  %v890_v29 = vrot.slane %v889_v28, 2 }
  0x4e   :  { %v41_v15 = vadd.f32 %v40_v14, %v39_v13  ;;  %v891_v30 = vadd.f32 %v890_v29, %v889_v28 }
  0x50   :  { %v42_v16 = vrot.slane %v41_v15, 1  ;;  %v892_v31 = vrot.slane %v891_v30, 1 }
  0x52   :  { %v3866_v17 = vadd.f32 %v42_v16, %v41_v15  ;;  %v3883_v32 = vadd.f32 %v892_v31, %v891_v30 }
  0x83   :  { %44 = vxpose.xlu0.b32.start.end [1/1] (short) %v3866_v17, 128 }
  0x90   :  { %v620_v18 = vpop.xlane.xlu1 %619 }
  0x91   :  { %v621_v19 = vmul.f32 0.015625, %v620_v18 }
  0x93   :  { %v3869_v20 = vsub.f32 %v24_v1, %v621_v19 }
  0x95   :  { %v697_v21 = vmul.f32 %v3869_v20, %v3869_v20  ;;  %3496 = vmatpush3.xpose.msk.msra.mxu1 %vm617_vm0, %v3869_v20 }
  0x96   :  { %3500 = vmatprep.subr.mxu1 %v4500_v7 }
  0x97   :  { %v698_v22 = vsel %vm617_vm0, %v697_v21, 0.0 }
  0x98   :  { %699 = vadd.xlane.f32.xlu1 %v698_v22  ;;  %3498 = vmatmul.mubr.msk.f32.vlgmr.msra.gmra.mrb[0].mxu1 %vm617_vm0, %v3869_v20 }
  0x99   :  { %3502 = vmatprep.mubr.msk.f32.mxu1 %vm3819_vm4, %v4500_v7 }
  0xc0   :  { %894 = vxpose.xlu0.b32.start.end [1/1] (short) %v3883_v32, 128 }
  0xc6   :  { %v92_v33 = vpop.trf.xlu0 }
  0xc7   :  { %3471 = vmatprep.mubr.msk.f32.mxu0 %vm108_vm3, %v92_v33 }
  0xca   :  { %v93_v34 = vpop.trf.xlu0 }
  0xcb   :  { %3472 = vmatmul.mubr.msk.f32.vlgmr.msra.gmra.mrb[0].mxu0 %vm108_vm3, %v93_v34 }
  0xce   :  { %v94_v35 = vpop.trf.xlu0 }
  0xcf   :  { %3474 = vmatprep.mubr.msk.f32.mxu0 %vm108_vm3, %v94_v35 }
  0xd2   :  { %v95_v36 = vpop.trf.xlu0 }
  0xd3   :  { %3475 = vmatmul.mubr.msk.f32.gmra.mrb[2].mxu0 %vm108_vm3, %v95_v36 }
  0xd6   :  { %v96_v37 = vpop.trf.xlu0 }
  0xd7   :  { %3477 = vmatprep.mubr.msk.f32.mxu0 %vm108_vm3, %v96_v37 }
  0xda   :  { %v97_v38 = vpop.trf.xlu0 }
  0xdb   :  { %3478 = vmatmul.mubr.msk.f32.gmra.mrb[4].mxu0 %vm108_vm3, %v97_v38 }
  0xde   :  { %v98_v39 = vpop.trf.xlu0 }
  0xdf   :  { %3480 = vmatprep.mubr.msk.f32.mxu0 %vm108_vm3, %v98_v39 }
  0xe2   :  { %v99_v40 = vpop.trf.xlu0 }
  0xe3   :  { %3481 = vmatmul.mubr.msk.f32.gmra.mrb[6].mxu0 %vm108_vm3, %v99_v40 }
  0xe6   :  { %v100_v41 = vpop.trf.xlu0 }
  0xe7   :  { %3483 = vmatprep.mubr.msk.f32.mxu0 %vm108_vm3, %v100_v41 }
  0xea   :  { %v101_v42 = vpop.trf.xlu0 }
  0xeb   :  { %3484 = vmatmul.mubr.msk.f32.gmra.mrb[8].mxu0 %vm108_vm3, %v101_v42 }
  0xee   :  { %v102_v43 = vpop.trf.xlu0 }
  0xef   :  { %3486 = vmatprep.mubr.msk.f32.mxu0 %vm108_vm3, %v102_v43 }
  0xf2   :  { %v103_v44 = vpop.trf.xlu0 }
  0xf3   :  { %3487 = vmatmul.mubr.msk.f32.gmra.mrb[10].mxu0 %vm108_vm3, %v103_v44 }
  0xf6   :  { %v104_v45 = vpop.trf.xlu0 }
  0xf7   :  { %3489 = vmatprep.mubr.msk.f32.mxu0 %vm108_vm3, %v104_v45 }
  0xfa   :  { %v105_v46 = vpop.trf.xlu0 }
  0xfb   :  { %3490 = vmatmul.mubr.msk.f32.gmra.mrb[12].mxu0 %vm108_vm3, %v105_v46 }
  0xfe   :  { %v106_v47 = vpop.trf.xlu0  ;;  %926 = vxpose.xlu0.b32.start.end [1/1] (short) %v3879_v25, 128 }
  0xff   :  { %3492 = vmatprep.mubr.msk.f32.mxu0 %vm108_vm3, %v106_v47 }
 0x102   :  { %v107_v48 = vpop.trf.xlu0 }
 0x103   :  { %3493 = vmatmul.mubr.msk.f32.gmra.mrb[14].mxu0 %vm108_vm3, %v107_v48 }
 0x104   :  { %3533 = vmatprep.mubr.msk.f32.mxu0 %vm3819_vm4, %v4500_v7 }
 0x106   :  { %v60_v49 = vpop.trf.xlu0 }
 0x107   :  { %320 = vperm.xlu1 %3621, %v60_v49  }
 0x10a   :  { %v61_v50 = vpop.trf.xlu0 }
 0x10e   :  { %v62_v51 = vpop.trf.xlu0 }
 0x112   :  { %v63_v52 = vpop.trf.xlu0 }
 0x116   :  { %v64_v53 = vpop.trf.xlu0 }
 0x11a   :  { %v65_v54 = vpop.trf.xlu0 }
 0x11e   :  { %v66_v55 = vpop.trf.xlu0 }
 0x122   :  { %v67_v56 = vpop.trf.xlu0 }
 0x125   :  { %v700_v33 = vpop.xlane.xlu1 %699 }
 0x126   :  { %v68_v57 = vpop.trf.xlu0  ;;  %v701_v34 = vmul.f32 0.015625, %v700_v33 }
 0x128   :  { %v702_v37 = vadd.f32 1e-12, %v701_v34  ;;  %v3820_v34 = vmov -1.0  }
 0x12a   :  { %v69_v58 = vpop.trf.xlu0  ;;  %3625 = vrsqrt.f32 %v702_v37 }
 0x12e   :  { %v70_v59 = vpop.trf.xlu0 }
 0x132   :  { %v71_v60 = vpop.trf.xlu0 }
 0x134   :  { %v3947_v43 = vpop.eup %3625 }
 0x136   :  { %v72_v61 = vpop.trf.xlu0 }
 0x13a   :  { %v73_v62 = vpop.trf.xlu0 }
 0x13e   :  { %v74_v63 = vpop.trf.xlu0 }
 0x142   :  { %v75_v0 = vpop.trf.xlu0 }
 0x146   :  { %v910_v1 = vpop.trf.xlu0 }
 0x147   :  { %1169 = vperm.xlu1 %3621, %v910_v1  }
 0x14a   :  { %v911_v2 = vpop.trf.xlu0 }
 0x14b   :  { %325 = vperm.xlu1 %3621, %v61_v50  }
 0x14e   :  { %v912_v3 = vpop.trf.xlu0 }
 0x14f   :  { %1174 = vperm.xlu1 %3621, %v911_v2  }
 0x152   :  { %v913_v4 = vpop.trf.xlu0 }
 0x153   :  { %330 = vperm.xlu1 %3621, %v62_v51  }
 0x156   :  { %v914_v5 = vpop.trf.xlu0 }
 0x157   :  { %1179 = vperm.xlu1 %3621, %v912_v3  }
 0x15a   :  { %v915_v6 = vpop.trf.xlu0 }
 0x15b   :  { %335 = vperm.xlu1 %3621, %v63_v52  }
 0x15e   :  { %v3908_v8 = vpop.trf.xlu0 }
 0x15f   :  { %1184 = vperm.xlu1 %3621, %v913_v4  }
 0x162   :  { %v917_v11 = vpop.trf.xlu0 }
 0x163   :  { %340 = vperm.xlu1 %3621, %v64_v53  }
 0x166   :  { %v918_v13 = vpop.trf.xlu0 }
 0x167   :  { %743 = vadd.xlane.f32.xlu0 %v742_v12  ;;  %1189 = vperm.xlu1 %3621, %v914_v5  }
 0x16a   :  { %v919_v14 = vpop.trf.xlu0 }
 0x16b   :  { %345 = vperm.xlu1 %3621, %v65_v54  }
 0x16e   :  { %v920_v15 = vpop.trf.xlu0 }
 0x16f   :  { %1194 = vperm.xlu1 %3621, %v915_v6  }
 0x172   :  { %v921_v16 = vpop.trf.xlu0 }
 0x173   :  { %350 = vperm.xlu1 %3621, %v66_v55  }
 0x176   :  { %v922_v18 = vpop.trf.xlu0 }
 0x177   :  { %355 = vperm.xlu1 %3621, %v67_v56  }
 0x17a   :  { %v923_v19 = vpop.trf.xlu0 }
 0x17b   :  { %360 = vperm.xlu1 %3621, %v68_v57  }
 0x17e   :  { %v924_v20 = vpop.trf.xlu0 }
 0x17f   :  { %365 = vperm.xlu1 %3621, %v69_v58  }
 0x182   :  { %v3925_v21 = vpop.trf.xlu0 }
 0x183   :  { %370 = vperm.xlu1 %3621, %v70_v59  }
 0x186   :  { %v942_v22 = vpop.trf.xlu0  ;;  %v321_v58 = vpop.permute.xlu1 %320 }
 0x187   :  { %375 = vperm.xlu1 %3621, %v71_v60  }
 0x18a   :  { %v3927_v23 = vpop.trf.xlu0 }
 0x18b   :  { %380 = vperm.xlu1 %3621, %v72_v61  }
 0x18e   :  { %v3931_v28 = vpop.trf.xlu0 }
 0x18f   :  { %385 = vperm.xlu1 %3621, %v73_v62  }
 0x192   :  { %v3935_v30 = vpop.trf.xlu0 }
 0x193   :  { %390 = vperm.xlu1 %3621, %v74_v63  }
 0x196   :  { %v946_v35 = vpop.trf.xlu0 }
 0x197   :  { %395 = vperm.xlu1 %3621, %v75_v0  }
 0x19a   :  { %v947_v39 = vpop.trf.xlu0 }
 0x19e   :  { %v3929_v26 = vpop.f32.mrb[0].mxu0  ;;  %v948_v42 = vpop.trf.xlu0 }
 0x19f   :  { %v223_v27 = vpop.f32.mrb[1].mxu0 }
 0x1a2   :  { %v949_v45 = vpop.trf.xlu0 }
 0x1a6   :  { %v3933_v29 = vpop.f32.mrb[2].mxu0  ;;  %v950_v47 = vpop.trf.xlu0 }
 0x1a7   :  { %v3937_v31 = vpop.f32.mrb[3].mxu0 }
 0x1aa   :  { %v951_v50 = vpop.trf.xlu0 }
 0x1ae   :  { %v3939_v36 = vpop.f32.mrb[4].mxu0  ;;  %v952_v53 = vpop.trf.xlu0 }
 0x1af   :  { %v3941_v38 = vpop.f32.mrb[5].mxu0 }
 0x1b2   :  { %v953_v54 = vpop.trf.xlu0 }
 0x1b6   :  { %v3943_v40 = vpop.f32.mrb[6].mxu0  ;;  %v954_v57 = vpop.trf.xlu0 }
 0x1b7   :  { %v3945_v41 = vpop.f32.mrb[7].mxu0 }
 0x1ba   :  { %v955_v59 = vpop.trf.xlu0 }
 0x1be   :  { %v3949_v44 = vpop.f32.mrb[8].mxu0  ;;  %v956_v61 = vpop.trf.xlu0 }
 0x1bf   :  { %v3951_v46 = vpop.f32.mrb[9].mxu0 }
 0x1c0   :  { %705 = vxpose.xlu1.b32.start.end [1/1] (short) (narrow) %v3947_v43, 8 }
 0x1c2   :  { %v957_v63 = vpop.trf.xlu0 }
 0x1c6   :  { %v3954_v48 = vpop.f32.mrb[10].mxu0  ;;  %v3966_v60 = vpop.permute.xlu1 %1169 }
 0x1c7   :  { %v3956_v49 = vpop.f32.mrb[11].mxu0 }
 0x1ca   :  { %v3968_v62 = vpop.permute.xlu1 %325 }
 0x1ce   :  { %v3958_v51 = vpop.f32.mrb[12].mxu0  ;;  %v3970_v0 = vpop.permute.xlu1 %1174 }
 0x1cf   :  { %v3960_v52 = vpop.f32.mrb[13].mxu0 }
 0x1d2   :  { %v331_v4 = vpop.permute.xlu1 %330 }
 0x1d6   :  { %v3962_v55 = vpop.f32.mrb[14].mxu0 }
 0x1d7   :  { %v3964_v56 = vpop.f32.mrb[15].mxu0 }
 0x1d8   :  { %4506 = vst [vmem:[#allocation10_spill] sm:$0xff] %v3964_v56 }
 0x1de   :  { %1204 = vperm.xlu1 %3621, %v917_v11   ;;  %v3979_v11 = vpop.permute.xlu1 %1179 }
 0x1e2   :  { %1209 = vperm.xlu1 %3621, %v918_v13   ;;  %v336_v13 = vpop.permute.xlu1 %335 }
 0x1e6   :  { %1214 = vperm.xlu1 %3621, %v919_v14  }
 0x1ea   :  { %1219 = vperm.xlu1 %3621, %v920_v15  }
 0x1ee   :  { %1224 = vperm.xlu1 %3621, %v921_v16   ;;  %v304_v16 = vmul.f32 2.0, %v3937_v31 }
 0x1f2   :  { %1229 = vperm.xlu1 %3621, %v922_v18  }
 0x1f4   :  { %v744_v1 = vpop.xlane.xlu0 %743 }
 0x1f5   :  { %v745_v2 = vmul.f32 0.015625, %v744_v1 }
 0x1f6   :  { %1234 = vperm.xlu1 %3621, %v923_v19   ;;  %v400_v19 = vsub.f32 %v304_v16, %v331_v4 }
 0x1f7   :  { %v746_v3 = vsub.f32 %v3921_v10, %v745_v2  ;;  %v302_v10 = vmul.f32 2.0, %v223_v27  ;;  %v4502_v27 = vlaneseq }
 0x1f9   :  { %3501 = vmatpush3.xpose.msk.msra.mxu1 %vm617_vm0, %v746_v3  ;;  %v821_v5 = vmul.f32 %v746_v3, %v746_v3  ;;  %v398_v12 = vsub.f32 %v302_v10, %v321_v58 }
 0x1fa   :  { %1239 = vperm.xlu1 %3621, %v924_v20   ;;  %3505 = vmatprep.subr.mxu1 %v3879_v25 }
 0x1fb   :  { %v822_v6 = vsel %vm617_vm0, %v821_v5, 0.0  ;;  %v414_v14 = vsub.f32 %v398_v12, %v3866_v17  ;;  %v303_v5 = vmul.f32 2.0, %v3929_v26 }
 0x1fc   :  { %823 = vadd.xlane.f32.xlu0 %v822_v6  ;;  %3503 = vmatmul.mubr.msk.f32.vlgmr.msra.gmra.mrb[2].mxu1 %vm617_vm0, %v746_v3 }
 0x1fd   :  { %3506 = vmatpush3.msra.mxu1 %v3879_v25  ;;  %3507 = vmatprep.mubr.msk.f32.mxu1 %vm108_vm3, %v942_v22  ;;  %v305_v25 = vmul.f32 2.0, %v3933_v29  ;;  %v430_v18 = vmin.f32 %v414_v14, 0.0  ;;  %v416_v22 = vsub.f32 %v400_v19, %v3866_v17  ;;  %v399_v10 = vsub.f32 %v303_v5, %v3968_v62 }
 0x1fe   :  { %1244 = vperm.xlu1 %3621, %v3925_v21   ;;  %3567 = vmatprep.subr.mxu1 %v4500_v7 }
 0x1ff   :  { %v401_v15 = vsub.f32 %v305_v25, %v336_v13  ;;  %v446_v21 = vmul.f32 1.442695, %v430_v18  ;;  %v415_v12 = vsub.f32 %v399_v10, %v3866_v17 }
 0x200   :  { %3508 = vmatmul.mubr.msk.f32.vlgmr.msra.gmra.mrb[4].mxu1 %vm108_vm3, %v3927_v23 }
 0x201   :  { %3510 = vmatprep.mubr.msk.f32.mxu1 %vm108_vm3, %v3931_v28  ;;  %v417_v20 = vsub.f32 %v401_v15, %v3866_v17  ;;  %3627 = vpow2.f32 %v446_v21  ;;  %v432_v28 = vmin.f32 %v416_v22, 0.0  ;;  %v431_v25 = vmin.f32 %v415_v12, 0.0 }
 0x203   :  { %v433_v23 = vmin.f32 %v417_v20, 0.0  ;;  %v450_v31 = vmul.f32 1.442695, %v432_v28  ;;  %v448_v15 = vmul.f32 1.442695, %v431_v25 }
 0x204   :  { %3511 = vmatmul.mubr.msk.f32.gmra.mrb[6].mxu1 %vm108_vm3, %v3935_v30  ;;  %v479_v30 = vand.u32 127, %v4502_v27 }
 0x205   :  { %3513 = vmatprep.mubr.msk.f32.mxu1 %vm108_vm3, %v946_v35  ;;  %v452_v29 = vmul.f32 1.442695, %v433_v23 }
 0x206   :  { %vm497_vm5 = vcmp.lt.s32.totalorder %v479_v30, 64 }
 0x207   :  { %3629 = vpow2.f32 %v452_v29  ;;  %v4007_v35 = vsel %vm497_vm5, 1.0, %v3820_v34 }
 0x208   :  { %3514 = vmatmul.mubr.msk.f32.gmra.mrb[8].mxu1 %vm108_vm3, %v947_v39  ;;  %3631 = vpow2.f32 %v450_v31 }
 0x209   :  { %3516 = vmatprep.mubr.msk.f32.mxu1 %vm108_vm3, %v948_v42 }
 0x20b   :  { %v3628_v33 = vpop.eup %3627 }
 0x20c   :  { %3517 = vmatmul.mubr.msk.f32.gmra.mrb[10].mxu1 %vm108_vm3, %v949_v45  ;;  %v531_v37 = vmul.f32 %v3628_v33, %v4007_v35 }
 0x20d   :  { %3519 = vmatprep.mubr.msk.f32.mxu1 %vm108_vm3, %v950_v47 }
 0x210   :  { %3520 = vmatmul.mubr.msk.f32.gmra.mrb[12].mxu1 %vm108_vm3, %v951_v50  ;;  %v4014_v50 = vpop.f32.mrb[0].mxu1 }
 0x211   :  { %3522 = vmatprep.mubr.msk.f32.mxu1 %vm108_vm3, %v952_v53  ;;  %v3630_v39 = vpop.eup %3629  ;;  %v3499_v53 = vpop.f32.mrb[1].mxu1 }
 0x212   :  { %v534_v42 = vmul.f32 %v3630_v39, %v4007_v35  ;;  %v3632_v45 = vpop.eup %3631 }
 0x213   :  { %v533_v47 = vmul.f32 %v3632_v45, %v4007_v35 }
 0x214   :  { %3523 = vmatmul.mubr.msk.f32.gmra.mrb[14].mxu1 %vm108_vm3, %v953_v54  ;;  %v4016_v54 = vpop.permute.xlu1 %1184 }
 0x215   :  { %3525 = vmatprep.mubr.msk.f32.mxu1 %vm108_vm3, %v954_v57 }
 0x218   :  { %3526 = vmatmul.mubr.msk.f32.gmra.mrb[16].mxu1 %vm108_vm3, %v955_v59  ;;  %v4018_v57 = vpop.permute.xlu1 %340 }
 0x219   :  { %3528 = vmatprep.mubr.msk.f32.mxu1 %vm108_vm3, %v956_v61 }
 0x21c   :  { %3529 = vmatmul.mubr.msk.f32.gmra.mrb[18].mxu1 %vm108_vm3, %v957_v63  ;;  %v4020_v63 = vpop.permute.xlu1 %1189 }
 0x21d   :  { %3569 = vmatprep.mubr.msk.f32.mxu1 %vm3819_vm4, %v4500_v7 }
 0x220   :  { %v4022_v1 = vpop.permute.xlu1 %345 }
 0x222   :  { %563 = vadd.xlane.f32.xlu1 %v531_v37 }
 0x224   :  { %v4024_v3 = vpop.permute.xlu1 %1194 }
 0x226   :  { %569 = vadd.xlane.f32.xlu1 %v534_v42 }
 0x228   :  { %v4026_v4 = vpop.permute.xlu1 %350 }
 0x22a   :  { %567 = vadd.xlane.f32.xlu1 %v533_v47 }
 0x22c   :  { %v4029_v6 = vpop.permute.xlu1 %355 }
 0x230   :  { %v4033_v13 = vpop.permute.xlu1 %360 }
 0x234   :  { %v4035_v14 = vpop.permute.xlu1 %365 }
 0x238   :  { %v4037_v16 = vpop.permute.xlu1 %370 }
 0x23c   :  { %v4039_v18 = vpop.permute.xlu1 %375 }
 0x240   :  { %v4042_v26 = vpop.permute.xlu1 %380 }
 0x244   :  { %v4045_v20 = vpop.permute.xlu1 %385 }
 0x248   :  { %v4047_v22 = vpop.permute.xlu1 %390 }
 0x249   :  { %4507 = vst [vmem:[#allocation11_spill] sm:$0xff] %v4047_v22 }
 0x24c   :  { %v4051_v33 = vpop.permute.xlu1 %395 }
 0x250   :  { %v721_v37 = vpop.trf.xlu1 }
 0x25d   :  { %v4060_v47 = vpop.permute.xlu1 %1204 }
 0x289   :  { %v824_v58 = vpop.xlane.xlu0 %823 }
 0x28a   :  { %v825_v59 = vmul.f32 0.015625, %v824_v58 }
 0x28c   :  { %v826_v61 = vadd.f32 1e-12, %v825_v59 }
 0x28e   :  { %3633 = vrsqrt.f32 %v826_v61 }
 0x28f   :  { %3635 = vpow2.f32 %v448_v15 }
 0x298   :  { %v3634_v2 = vpop.eup %3633 }
 0x299   :  { %829 = vxpose.xlu0.b32.start.end [1/1] (short) (narrow) %v3634_v2, 8  ;;  %v3636_v19 = vpop.eup %3635 }
 0x29a   :  { %v532_v62 = vmul.f32 %v3636_v19, %v4007_v35 }
 0x2c2   :  { %3622 = vset.pattern.permute.xlu0 %v3817_v24 }
 0x2c6   :  { %565 = vadd.xlane.f32.xlu0 %v532_v62 }
 0x2cf   :  { %v816_v21 = vpop.f32.mrb[2].mxu1 }
 0x2d0   :  { %v820_v23 = vmul.f32 0.015625, %v816_v21  ;;  %v3504_v28 = vpop.f32.mrb[3].mxu1 }
 0x2d2   :  { %v4049_v29 = vmul.f32 %v3634_v2, %v820_v23  ;;  %v1210_v2 = vpop.permute.xlu1 %1209 }
 0x2d3   :  { %v3509_v30 = vpop.f32.mrb[4].mxu1 }
 0x2d4   :  { %v1072_v31 = vpop.f32.mrb[5].mxu1 }
 0x2d5   :  { %v1151_v22 = vmul.f32 2.0, %v1072_v31 }
 0x2d7   :  { %v3512_v34 = vpop.f32.mrb[6].mxu1 }
 0x2d8   :  { %v1082_v24 = vpop.f32.mrb[7].mxu1 }
 0x2db   :  { %v4053_v39 = vpop.f32.mrb[8].mxu1 }
 0x2dc   :  { %1199 = vperm.xlu0 %3622, %v3908_v8   ;;  %v4056_v42 = vpop.f32.mrb[9].mxu1 }
 0x2df   :  { %v4058_v45 = vpop.f32.mrb[10].mxu1 }
 0x2e0   :  { %v4062_v53 = vpop.f32.mrb[11].mxu1 }
 0x2e3   :  { %v4064_v58 = vpop.f32.mrb[12].mxu1 }
 0x2e4   :  { %v1112_v59 = vpop.f32.mrb[13].mxu1 }
 0x2e5   :  { %v1159_v61 = vmul.f32 2.0, %v1112_v59 }
 0x2e7   :  { %v1255_v5 = vsub.f32 %v1159_v61, %v1210_v2  ;;  %v4066_v10 = vpop.f32.mrb[14].mxu1  ;;  %v307_v2 = vmul.f32 2.0, %v3939_v36  ;;  %v696_v36 = vmul.f32 0.015625, %v4014_v50 }
 0x2e8   :  { %v4068_v12 = vpop.f32.mrb[15].mxu1 }
 0x2e9   :  { %v1271_v8 = vsub.f32 %v1255_v5, %v3883_v32  ;;  %v403_v5 = vsub.f32 %v307_v2, %v4022_v1  ;;  %v1154_v2 = vmul.f32 2.0, %v3512_v34 }
 0x2eb   :  { %v1287_v25 = vmin.f32 %v1271_v8, 0.0  ;;  %v4071_v15 = vpop.f32.mrb[16].mxu1  ;;  %v306_v8 = vmul.f32 2.0, %v3941_v38  ;;  %v1247_v38 = vsub.f32 %v1151_v22, %v3966_v60 }
 0x2ec   :  { %v4073_v19 = vpop.f32.mrb[17].mxu1 }
 0x2ed   :  { %v1311_v62 = vmul.f32 1.442695, %v1287_v25  ;;  %v402_v7 = vsub.f32 %v306_v8, %v4018_v57  ;;  %v419_v25 = vsub.f32 %v403_v5, %v3866_v17  ;;  %v1263_v31 = vsub.f32 %v1247_v38, %v3883_v32 }
 0x2ee   :  { %v309_v8 = vmul.f32 2.0, %v3943_v40 }
 0x2ef   :  { %3637 = vpow2.f32 %v1311_v62  ;;  %v4075_v21 = vpop.f32.mrb[18].mxu1  ;;  %v1152_v62 = vmul.f32 2.0, %v3509_v30  ;;  %v418_v27 = vsub.f32 %v402_v7, %v3866_v17  ;;  %v435_v56 = vmin.f32 %v419_v25, 0.0 }
 0x2f0   :  { %v4077_v23 = vpop.f32.mrb[19].mxu1  ;;  %v1279_v60 = vmin.f32 %v1263_v31, 0.0 }
 0x2f1   :  { %4508 = vst [vmem:[#allocation12_spill] sm:$0xff] %v4077_v23  ;;  %v738_v23 = vshrl.u32 %v4509_v9, 7  ;;  %v456_v1 = vmul.f32 1.442695, %v435_v56  ;;  %v704_v9 = vmul.f32 %v3947_v43, %v696_v36  ;;  %v308_v36 = vmul.f32 2.0, %v3945_v41 }
 0x2f3   :  { %3639 = vpow2.f32 %v456_v1 }
 0x2f9   :  { %v3638_v28 = vpop.eup %3637 }
 0x2fa   :  { %v1335_v59 = vmul.f32 %v3638_v28, %v4007_v35  ;;  %v1248_v28 = vsub.f32 %v1152_v62, %v3970_v0  ;;  %v405_v62 = vsub.f32 %v309_v8, %v4029_v6  ;;  %v1156_v6 = vmul.f32 2.0, %v4053_v39 }
 0x2fc   :  { %v1351_v61 = vmul.f32 -1.0, %v1335_v59  ;;  %v434_v59 = vmin.f32 %v418_v27, 0.0  ;;  %v1264_v57 = vsub.f32 %v1248_v28, %v3883_v32  ;;  %v1250_v27 = vsub.f32 %v1154_v2, %v4016_v54 }
 0x2fd   :  { %v1295_v54 = vmul.f32 1.442695, %v1279_v60  ;;  %v3640_v38 = vpop.eup %3639  ;;  %v1252_v31 = vsub.f32 %v1156_v6, %v4024_v3 }
 0x2fe   :  { %1375 = vadd.xlane.f32.xlu0 %v1351_v61  ;;  %v4088_v61 = vsub.s32 0, %v738_v23  ;;  %v454_v30 = vmul.f32 1.442695, %v434_v59  ;;  %v1280_v0 = vmin.f32 %v1264_v57, 0.0  ;;  %v1153_v23 = vmul.f32 2.0, %v1082_v24 }
 0x2ff   :  { %v1266_v34 = vsub.f32 %v1250_v27, %v3883_v32  ;;  %v1268_v39 = vsub.f32 %v1252_v31, %v3883_v32 }
 0x300   :  { %v740_v7 = vrot.slane %v721_v37, %v4088_v61  ;;  %3641 = vpow2.f32 %v454_v30  ;;  %v1297_v22 = vmul.f32 1.442695, %v1280_v0  ;;  %v1249_v37 = vsub.f32 %v1153_v23, %v3979_v11 }
 0x301   :  { %v1282_v24 = vmin.f32 %v1266_v34, 0.0  ;;  %v404_v11 = vsub.f32 %v308_v36, %v4026_v4  ;;  %v536_v30 = vmul.f32 %v3640_v38, %v4007_v35  ;;  %v1155_v4 = vmul.f32 2.0, %v4056_v42 }
 0x302   :  { %v741_v56 = vmul.f32 %v740_v7, %v704_v9  ;;  %3643 = vpow2.f32 %v1297_v22  ;;  %v1265_v28 = vsub.f32 %v1249_v37, %v3883_v32  ;;  %v1284_v3 = vmin.f32 %v1268_v39, 0.0  ;;  %v1215_v39 = vpop.permute.xlu1 %1214 }
 0x303   :  { %3645 = vpow2.f32 %v1295_v54  ;;  %v1301_v40 = vmul.f32 1.442695, %v1282_v24  ;;  %v420_v7 = vsub.f32 %v404_v11, %v3866_v17 }
 0x304   :  { %v1281_v57 = vmin.f32 %v1265_v28, 0.0 }
 0x305   :  { %3647 = vpow2.f32 %v1301_v40  ;;  %v436_v23 = vmin.f32 %v420_v7, 0.0  ;;  %v311_v7 = vmul.f32 2.0, %v3949_v44 }
 0x306   :  { %v1299_v41 = vmul.f32 1.442695, %v1281_v57 }
 0x307   :  { %v458_v34 = vmul.f32 1.442695, %v436_v23 }
 0x308   :  { %3649 = vpow2.f32 %v1299_v41  ;;  %v310_v41 = vmul.f32 2.0, %v3951_v46 }
 0x30a   :  { %v3642_v2 = vpop.eup %3641  ;;  %v406_v31 = vsub.f32 %v310_v41, %v4033_v13 }
 0x30b   :  { %v535_v0 = vmul.f32 %v3642_v2, %v4007_v35 }
 0x30c   :  { %v3644_v27 = vpop.eup %3643  ;;  %v422_v23 = vsub.f32 %v406_v31, %v3866_v17 }
 0x30d   :  { %v1328_v60 = vmul.f32 %v3644_v27, %v4007_v35  ;;  %v3646_v22 = vpop.eup %3645 }
 0x30f   :  { %v3648_v8 = vpop.eup %3647 }
 0x312   :  { %v3650_v54 = vpop.eup %3649 }
 0x319   :  { %v845_v5 = vpop.trf.xlu0 }
 0x31a   :  { %v864_v50 = vrot.slane %v845_v5, %v4088_v61 }
 0x31c   :  { %v865_v43 = vmul.f32 %v864_v50, %v4049_v29  ;;  %v421_v29 = vsub.f32 %v405_v62, %v3866_v17  ;;  %v1251_v50 = vsub.f32 %v1155_v4, %v4020_v63  ;;  %v1330_v62 = vmul.f32 %v3648_v8, %v4007_v35 }
 0x31e   :  { %v866_v25 = vsub.f32 %v741_v56, %v865_v43  ;;  %v437_v9 = vmin.f32 %v421_v29, 0.0  ;;  %v1158_v56 = vmul.f32 2.0, %v4058_v45  ;;  %v1267_v42 = vsub.f32 %v1251_v50, %v3883_v32 }
 0x31f   :  { %v1327_v43 = vmul.f32 %v3646_v22, %v4007_v35  ;;  %v1157_v50 = vmul.f32 2.0, %v4062_v53  ;;  %v1162_v53 = vmul.f32 2.0, %v4066_v10 }
 0x320   :  { %v867_v59 = vand.u32 2147483647, %v866_v25  ;;  %v460_v5 = vmul.f32 1.442695, %v437_v9  ;;  %v1254_v37 = vsub.f32 %v1158_v56, %v4060_v47  ;;  %v1305_v25 = vmul.f32 1.442695, %v1284_v3 }
 0x321   :  { %v1283_v63 = vmin.f32 %v1267_v42, 0.0  ;;  %v407_v9 = vsub.f32 %v311_v7, %v4035_v14  ;;  %v438_v14 = vmin.f32 %v422_v23, 0.0 }
 0x322   :  { %v868_v1 = vsel %vm108_vm3, %v867_v59, 0.0  ;;  %3651 = vpow2.f32 %v460_v5  ;;  %v1270_v45 = vsub.f32 %v1254_v37, %v3883_v32  ;;  %v1329_v59 = vmul.f32 %v3650_v54, %v4007_v35 }
 0x323   :  { %869 = vadd.xlane.f32.xlu1 %v868_v1  ;;  %3653 = vpow2.f32 %v458_v34  ;;  %v1303_v24 = vmul.f32 1.442695, %v1283_v63  ;;  %v423_v4 = vsub.f32 %v407_v9, %v3866_v17  ;;  %v1220_v34 = vpop.permute.xlu1 %1219  ;;  %v462_v42 = vmul.f32 1.442695, %v438_v14 }
 0x324   :  { %3655 = vpow2.f32 %v1305_v25  ;;  %v1286_v28 = vmin.f32 %v1270_v45, 0.0  ;;  %v312_v54 = vmul.f32 2.0, %v3956_v49 }
 0x325   :  { %3657 = vpow2.f32 %v1303_v24  ;;  %v439_v5 = vmin.f32 %v423_v4, 0.0 }
 0x326   :  { %v1309_v47 = vmul.f32 1.442695, %v1286_v28 }
 0x327   :  { %573 = vadd.xlane.f32.xlu1 %v536_v30  ;;  %v464_v22 = vmul.f32 1.442695, %v439_v5  ;;  %v1225_v25 = vpop.permute.xlu1 %1224 }
 0x328   :  { %3659 = vpow2.f32 %v1309_v47 }
 0x329   :  { %3661 = vpow2.f32 %v464_v22  ;;  %v4166_v22 = vld [vmem:[%s4496_s2 + $0x8] sm:$0xff] }
 0x32b   :  { %571 = vadd.xlane.f32.xlu1 %v535_v0  ;;  %v1160_v0 = vmul.f32 2.0, %v4064_v58  ;;  %v313_v58 = vmul.f32 2.0, %v3954_v48  ;;  %v408_v48 = vsub.f32 %v312_v54, %v4037_v16 }
 0x32c   :  { %v3652_v36 = vpop.eup %3651 }
 0x32d   :  { %v538_v38 = vmul.f32 %v3652_v36, %v4007_v35  ;;  %v3654_v1 = vpop.eup %3653  ;;  %v1256_v44 = vsub.f32 %v1160_v0, %v1215_v39  ;;  %v409_v37 = vsub.f32 %v313_v58, %v4039_v18  ;;  %v1161_v18 = vmul.f32 2.0, %v4068_v12 }
 0x32e   :  { %v537_v11 = vmul.f32 %v3654_v1, %v4007_v35  ;;  %v3656_v29 = vpop.eup %3655  ;;  %v424_v10 = vsub.f32 %v408_v48, %v3866_v17  ;;  %v1413_v58 = vsel %vm617_vm0, %v4166_v22, 0.0 }
 0x32f   :  { %1361 = vadd.xlane.f32.xlu1 %v1328_v60  ;;  %v1332_v40 = vmul.f32 %v3656_v29, %v4007_v35  ;;  %v3658_v57 = vpop.eup %3657  ;;  %v1272_v46 = vsub.f32 %v1256_v44, %v3883_v32  ;;  %v425_v63 = vsub.f32 %v409_v37, %v3866_v17  ;;  %v1257_v1 = vsub.f32 %v1161_v18, %v1220_v34  ;;  %v1230_v29 = vpop.permute.xlu1 %1229 }
 0x330   :  { %v1331_v6 = vmul.f32 %v3658_v57, %v4007_v35  ;;  %v440_v57 = vmin.f32 %v424_v10, 0.0  ;;  %v317_v37 = vmul.f32 2.0, %v3962_v55 }
 0x331   :  { %v441_v24 = vmin.f32 %v425_v63, 0.0  ;;  %v1166_v63 = vmul.f32 2.0, %v4075_v21  ;;  %v4511_v21 = vld [vmem:[#allocation11_spill] sm:$0xff] }
 0x332   :  { %v3660_v2 = vpop.eup %3659  ;;  %v466_v4 = vmul.f32 1.442695, %v440_v57 }
 0x333   :  { %1359 = vadd.xlane.f32.xlu1 %v1327_v43  ;;  %v1334_v30 = vmul.f32 %v3660_v2, %v4007_v35  ;;  %v1288_v43 = vmin.f32 %v1272_v46, 0.0  ;;  %v468_v47 = vmul.f32 1.442695, %v441_v24  ;;  %v1273_v2 = vsub.f32 %v1257_v1, %v3883_v32  ;;  %v1235_v31 = vpop.permute.xlu1 %1234 }
 0x335   :  { %v1313_v45 = vmul.f32 1.442695, %v1288_v43  ;;  %v1289_v0 = vmin.f32 %v1273_v2, 0.0 }
 0x337   :  { %1365 = vadd.xlane.f32.xlu1 %v1330_v62  ;;  %v1258_v62 = vsub.f32 %v1162_v53, %v1225_v25  ;;  %v1315_v44 = vmul.f32 1.442695, %v1289_v0  ;;  %v413_v53 = vsub.f32 %v317_v37, %v4051_v33 }
 0x339   :  { %v1274_v28 = vsub.f32 %v1258_v62, %v3883_v32 }
 0x33b   :  { %1363 = vadd.xlane.f32.xlu1 %v1329_v59  ;;  %v3662_v59 = vpop.eup %3661 }
 0x33c   :  { %v540_v16 = vmul.f32 %v3662_v59, %v4007_v35  ;;  %v4510_v59 = vld [vmem:[#allocation10_spill] sm:$0xff] }
 0x33d   :  { %v316_v10 = vmul.f32 2.0, %v4510_v59 }
 0x33e   :  { %v556_v7 = vmul.f32 -1.0, %v540_v16 }
 0x33f   :  { %577 = vadd.xlane.f32.xlu1 %v538_v38  ;;  %v1290_v38 = vmin.f32 %v1274_v28, 0.0  ;;  %v429_v28 = vsub.f32 %v413_v53, %v3866_v17 }
 0x341   :  { %v1317_v12 = vmul.f32 1.442695, %v1290_v38  ;;  %v412_v38 = vsub.f32 %v316_v10, %v4511_v21  ;;  %v445_v1 = vmin.f32 %v429_v28, 0.0 }
 0x343   :  { %575 = vadd.xlane.f32.xlu1 %v537_v11  ;;  %v315_v11 = vmul.f32 2.0, %v3958_v51  ;;  %v476_v2 = vmul.f32 1.442695, %v445_v1 }
 0x347   :  { %1369 = vadd.xlane.f32.xlu1 %v1332_v40 }
 0x34b   :  { %1367 = vadd.xlane.f32.xlu1 %v1331_v6  ;;  %v411_v6 = vsub.f32 %v315_v11, %v4045_v20  ;;  %v314_v20 = vmul.f32 2.0, %v3960_v52 }
 0x34d   :  { %v427_v41 = vsub.f32 %v411_v6, %v3866_v17 }
 0x34f   :  { %1373 = vadd.xlane.f32.xlu1 %v1334_v30  ;;  %v1164_v30 = vmul.f32 2.0, %v4071_v15  ;;  %v443_v15 = vmin.f32 %v427_v41, 0.0 }
 0x351   :  { %v1260_v23 = vsub.f32 %v1164_v30, %v1235_v31 }
 0x353   :  { %v4135_v27 = vpop.xlane.xlu0 %565 }
 0x35b   :  { %v1200_v56 = vpop.permute.xlu0 %1199 }
 0x35c   :  { %v1253_v60 = vsub.f32 %v1157_v50, %v1200_v56  ;;  %v410_v50 = vsub.f32 %v314_v20, %v4042_v26  ;;  %v1276_v56 = vsub.f32 %v1260_v23, %v3883_v32 }
 0x35e   :  { %v1269_v13 = vsub.f32 %v1253_v60, %v3883_v32  ;;  %v1163_v60 = vmul.f32 2.0, %v4073_v19  ;;  %v426_v46 = vsub.f32 %v410_v50, %v3866_v17  ;;  %v1292_v26 = vmin.f32 %v1276_v56, 0.0 }
 0x360   :  { %v1285_v3 = vmin.f32 %v1269_v13, 0.0  ;;  %v472_v13 = vmul.f32 1.442695, %v443_v15  ;;  %v1259_v34 = vsub.f32 %v1163_v60, %v1230_v29  ;;  %v442_v43 = vmin.f32 %v426_v46, 0.0 }
 0x362   :  { %v1307_v8 = vmul.f32 1.442695, %v1285_v3  ;;  %v1240_v3 = vpop.permute.xlu1 %1239  ;;  %v1275_v25 = vsub.f32 %v1259_v34, %v3883_v32  ;;  %v470_v48 = vmul.f32 1.442695, %v442_v43 }
 0x364   :  { %3663 = vpow2.f32 %v1307_v8  ;;  %v1321_v8 = vmul.f32 1.442695, %v1292_v26  ;;  %v1291_v55 = vmin.f32 %v1275_v25, 0.0 }
 0x365   :  { %3665 = vpow2.f32 %v462_v42 }
 0x366   :  { %3667 = vpow2.f32 %v1313_v45  ;;  %v1245_v24 = vpop.permute.xlu1 %1244  ;;  %v1319_v11 = vmul.f32 1.442695, %v1291_v55 }
 0x367   :  { %3669 = vpow2.f32 %v468_v47  ;;  %v1262_v18 = vsub.f32 %v1166_v63, %v1245_v24 }
 0x368   :  { %3671 = vpow2.f32 %v1317_v12  ;;  %v428_v12 = vsub.f32 %v412_v38, %v3866_v17 }
 0x369   :  { %3673 = vpow2.f32 %v466_v4  ;;  %v1278_v29 = vsub.f32 %v1262_v18, %v3883_v32 }
 0x36a   :  { %3675 = vpow2.f32 %v1315_v44  ;;  %v444_v31 = vmin.f32 %v428_v12, 0.0  ;;  %v564_v26 = vpop.xlane.xlu1 %563 }
 0x36b   :  { %3677 = vpow2.f32 %v472_v13  ;;  %v1294_v30 = vmin.f32 %v1278_v29, 0.0  ;;  %v595_v63 = vadd.f32 %v4135_v27, %v564_v26 }
 0x36c   :  { %3679 = vpow2.f32 %v1321_v8  ;;  %v474_v17 = vmul.f32 1.442695, %v444_v31 }
 0x36d   :  { %3681 = vpow2.f32 %v470_v48  ;;  %v1325_v4 = vmul.f32 1.442695, %v1294_v30 }
 0x36e   :  { %v3664_v36 = vpop.eup %3663  ;;  %3683 = vpow2.f32 %v1319_v11 }
 0x36f   :  { %v1333_v49 = vmul.f32 %v3664_v36, %v4007_v35  ;;  %v3666_v40 = vpop.eup %3665  ;;  %3685 = vpow2.f32 %v476_v2 }
 0x370   :  { %v539_v9 = vmul.f32 %v3666_v40, %v4007_v35  ;;  %v3668_v51 = vpop.eup %3667  ;;  %3687 = vpow2.f32 %v1325_v4 }
 0x371   :  { %1371 = vadd.xlane.f32.xlu1 %v1333_v49  ;;  %v1336_v39 = vmul.f32 %v3668_v51, %v4007_v35  ;;  %v3670_v52 = vpop.eup %3669  ;;  %v4512_v49 = vld [vmem:[#allocation12_spill] sm:$0xff]  ;;  %3689 = vpow2.f32 %v474_v17 }
 0x372   :  { %v555_v5 = vmul.f32 -1.0, %v539_v9  ;;  %v542_v19 = vmul.f32 %v3670_v52, %v4007_v35  ;;  %v3672_v42 = vpop.eup %3671  ;;  %v1165_v16 = vmul.f32 2.0, %v4512_v49 }
 0x373   :  { %v1352_v14 = vmul.f32 -1.0, %v1336_v39  ;;  %v1338_v62 = vmul.f32 %v3672_v42, %v4007_v35  ;;  %v3674_v54 = vpop.eup %3673 }
 0x374   :  { %v558_v45 = vmul.f32 -1.0, %v542_v19  ;;  %v541_v36 = vmul.f32 %v3674_v54, %v4007_v35  ;;  %v3676_v47 = vpop.eup %3675  ;;  %v570_v19 = vpop.xlane.xlu1 %569 }
 0x375   :  { %581 = vadd.xlane.f32.xlu1 %v556_v7  ;;  %v1354_v33 = vmul.f32 -1.0, %v1338_v62  ;;  %v3678_v40 = vpop.eup %3677  ;;  %v1337_v6 = vmul.f32 %v3676_v47, %v4007_v35  ;;  %v1261_v7 = vsub.f32 %v1165_v16, %v1240_v3 }
 0x376   :  { %v557_v57 = vmul.f32 -1.0, %v541_v36  ;;  %v544_v51 = vmul.f32 %v3678_v40, %v4007_v35  ;;  %v3680_v41 = vpop.eup %3679 }
 0x377   :  { %v1353_v9 = vmul.f32 -1.0, %v1337_v6  ;;  %v1277_v0 = vsub.f32 %v1261_v7, %v3883_v32  ;;  %v3682_v23 = vpop.eup %3681 }
 0x378   :  { %v560_v20 = vmul.f32 -1.0, %v544_v51  ;;  %v543_v15 = vmul.f32 %v3682_v23, %v4007_v35  ;;  %v3684_v44 = vpop.eup %3683  ;;  %v568_v25 = vpop.xlane.xlu1 %567 }
 0x379   :  { %579 = vadd.xlane.f32.xlu1 %v555_v5  ;;  %v1340_v5 = vmul.f32 %v3680_v41, %v4007_v35  ;;  %v1293_v39 = vmin.f32 %v1277_v0, 0.0  ;;  %v3686_v52 = vpop.eup %3685  ;;  %v596_v54 = vadd.f32 %v595_v63, %v568_v25 }
 0x37a   :  { %v559_v60 = vmul.f32 -1.0, %v543_v15  ;;  %v546_v46 = vmul.f32 %v3686_v52, %v4007_v35  ;;  %v3688_v13 = vpop.eup %3687 }
 0x37b   :  { %v1356_v50 = vmul.f32 -1.0, %v1340_v5  ;;  %v1323_v56 = vmul.f32 1.442695, %v1293_v39  ;;  %v3690_v3 = vpop.eup %3689  ;;  %v597_v24 = vadd.f32 %v596_v54, %v570_v19  ;;  %v4513_v5 = vmov 0.0  }
 0x37c   :  { %v562_v34 = vmul.f32 -1.0, %v546_v46  ;;  %v545_v37 = vmul.f32 %v3690_v3, %v4007_v35 }
 0x37d   :  { %1377 = vadd.xlane.f32.xlu1 %v1352_v14  ;;  %v1339_v14 = vmul.f32 %v3684_v44, %v4007_v35  ;;  %3691 = vpow2.f32 %v1323_v56 }
 0x37e   :  { %v561_v53 = vmul.f32 -1.0, %v545_v37 }
 0x37f   :  { %v1355_v32 = vmul.f32 -1.0, %v1339_v14 }
 0x381   :  { %1414 = vadd.xlane.f32.xlu1 %v1413_v58  ;;  %v1342_v58 = vmul.f32 %v3688_v13, %v4007_v35 }
 0x383   :  { %v1358_v42 = vmul.f32 -1.0, %v1342_v58 }
 0x385   :  { %585 = vadd.xlane.f32.xlu1 %v558_v45 }
 0x387   :  { %v3692_v43 = vpop.eup %3691 }
 0x388   :  { %v1341_v8 = vmul.f32 %v3692_v43, %v4007_v35 }
 0x389   :  { %1381 = vadd.xlane.f32.xlu1 %v1354_v33 }
 0x38a   :  { %v1357_v45 = vmul.f32 -1.0, %v1341_v8 }
 0x38d   :  { %583 = vadd.xlane.f32.xlu1 %v557_v57 }
 0x391   :  { %1379 = vadd.xlane.f32.xlu1 %v1353_v9 }
 0x395   :  { %589 = vadd.xlane.f32.xlu1 %v560_v20  ;;  %v3318_v20 = vld [vmem:[%s4497_s3 + $0x8] sm:$0xff] }
 0x399   :  { %1385 = vadd.xlane.f32.xlu1 %v1356_v50  ;;  %v1537_v50 = vsel %vm617_vm0, %v3318_v20, 0.0 }
 0x39d   :  { %587 = vadd.xlane.f32.xlu1 %v559_v60 }
 0x3a1   :  { %1383 = vadd.xlane.f32.xlu1 %v1355_v32  ;;  %v1376_v32 = vpop.xlane.xlu0 %1375 }
 0x3a5   :  { %593 = vadd.xlane.f32.xlu1 %v562_v34 }
 0x3a9   :  { %1389 = vadd.xlane.f32.xlu1 %v1358_v42 }
 0x3ad   :  { %591 = vadd.xlane.f32.xlu1 %v561_v53 }
 0x3b0   :  { %v4195_v62 = vpop.xlane.xlu1 %869 }
 0x3b1   :  { %1387 = vadd.xlane.f32.xlu1 %v1357_v45 }
 0x3b4   :  { %v574_v48 = vpop.xlane.xlu1 %573 }
 0x3b8   :  { %v572_v28 = vpop.xlane.xlu1 %571 }
 0x3b9   :  { %v598_v55 = vadd.f32 %v597_v24, %v572_v28 }
 0x3bb   :  { %v599_v18 = vadd.f32 %v598_v55, %v574_v48 }
 0x3bc   :  { %v1362_v59 = vpop.xlane.xlu1 %1361 }
 0x3c0   :  { %v1360_v10 = vpop.xlane.xlu1 %1359 }
 0x3c1   :  { %v1391_v33 = vadd.f32 %v1362_v59, %v1360_v10 }
 0x3c4   :  { %v1366_v36 = vpop.xlane.xlu1 %1365 }
 0x3c8   :  { %v1364_v47 = vpop.xlane.xlu1 %1363 }
 0x3c9   :  { %v1392_v21 = vadd.f32 %v1391_v33, %v1364_v47 }
 0x3cb   :  { %v1393_v38 = vadd.f32 %v1392_v21, %v1366_v36 }
 0x3cc   :  { %v578_v1 = vpop.xlane.xlu1 %577 }
 0x3d0   :  { %v576_v11 = vpop.xlane.xlu1 %575 }
 0x3d1   :  { %v600_v27 = vadd.f32 %v599_v18, %v576_v11 }
 0x3d3   :  { %v601_v29 = vadd.f32 %v600_v27, %v578_v1 }
 0x3d4   :  { %v1370_v49 = vpop.xlane.xlu1 %1369 }
 0x3d8   :  { %v1368_v16 = vpop.xlane.xlu1 %1367 }
 0x3d9   :  { %v1394_v40 = vadd.f32 %v1393_v38, %v1368_v16 }
 0x3db   :  { %v1395_v57 = vadd.f32 %v1394_v40, %v1370_v49 }
 0x3dc   :  { %v1374_v6 = vpop.xlane.xlu1 %1373 }
 0x3fe   :  { %v1372_v12 = vpop.xlane.xlu1 %1371 }
 0x3ff   :  { %v1396_v2 = vadd.f32 %v1395_v57, %v1372_v12 }
 0x401   :  { %v1397_v30 = vadd.f32 %v1396_v2, %v1374_v6  ;;  %v3339_v2 = vld [vmem:[%s4495_s1 + $0x10] sm:$0xff] }
 0x402   :  { %v582_v7 = vpop.xlane.xlu1 %581 }
 0x403   :  { %v1398_v13 = vadd.f32 %v1397_v30, %v1376_v32 }
 0x406   :  { %v580_v9 = vpop.xlane.xlu1 %579 }
 0x407   :  { %v602_v60 = vadd.f32 %v601_v29, %v580_v9  ;;  %v4514_v9 = vld [vmem:[#allocation9_spill] sm:$0xff] }
 0x409   :  { %v603_v52 = vadd.f32 %v602_v60, %v582_v7 }
 0x40a   :  { %v1378_v51 = vpop.xlane.xlu1 %1377 }
 0x40b   :  { %v1399_v34 = vadd.f32 %v1398_v13, %v1378_v51  ;;  %v1681_v51 = vmul.f32 %v3339_v2, %v4514_v9 }
 0x40e   :  { %v1415_v41 = vpop.xlane.xlu1 %1414 }
 0x40f   :  { %v1416_v31 = vmul.f32 0.015625, %v1415_v41 }
 0x411   :  { %v1417_v4 = vsub.f32 %v4166_v22, %v1416_v31 }
 0x412   :  { %v586_v0 = vpop.xlane.xlu1 %585 }
 0x413   :  { %3532 = vmatpush3.xpose.msk.msra.mxu0 %vm617_vm0, %v1417_v4  ;;  %v1492_v23 = vmul.f32 %v1417_v4, %v1417_v4 }
 0x414   :  { %3536 = vmatprep.subr.mxu0 %v4513_v5 }
 0x415   :  { %v1493_v17 = vsel %vm617_vm0, %v1492_v23, 0.0 }
 0x416   :  { %3534 = vmatmul.mubr.msk.f32.vlgmr.msra.gmra.mrb[16].mxu0 %vm617_vm0, %v1417_v4  ;;  %1494 = vadd.xlane.f32.xlu0 %v1493_v17  ;;  %v1382_v39 = vpop.xlane.xlu1 %1381 }
 0x417   :  { %3538 = vmatprep.mubr.msk.f32.mxu0 %vm3819_vm4, %v4513_v5 }
 0x41a   :  { %1538 = vadd.xlane.f32.xlu0 %v1537_v50  ;;  %v584_v22 = vpop.xlane.xlu1 %583 }
 0x41b   :  { %v604_v26 = vadd.f32 %v603_v52, %v584_v22 }
 0x41d   :  { %v605_v19 = vadd.f32 %v604_v26, %v586_v0 }
 0x41e   :  { %v1380_v15 = vpop.xlane.xlu1 %1379 }
 0x41f   :  { %v1400_v3 = vadd.f32 %v1399_v34, %v1380_v15 }
 0x421   :  { %v1401_v43 = vadd.f32 %v1400_v3, %v1382_v39  ;;  %v1682_v39 = vmul.f32 %v1681_v51, %v1681_v51 }
 0x422   :  { %v590_v44 = vpop.xlane.xlu1 %589 }
 0x423   :  { %v1683_v50 = vrot.slane %v1682_v39, 4 }
 0x426   :  { %v1386_v56 = vpop.xlane.xlu1 %1385 }
 0x42a   :  { %v588_v14 = vpop.xlane.xlu1 %587 }
 0x42b   :  { %v606_v42 = vadd.f32 %v605_v19, %v588_v14 }
 0x42d   :  { %v607_v8 = vadd.f32 %v606_v42, %v590_v44  ;;  %v1684_v44 = vadd.f32 %v1683_v50, %v1682_v39  ;;  %v871_v39 = vrot.slane %v4195_v62, 4 }
 0x42e   :  { %v1384_v46 = vpop.xlane.xlu1 %1383 }
 0x42f   :  { %v1402_v53 = vadd.f32 %v1401_v43, %v1384_v46  ;;  %v1685_v60 = vrot.slane %v1684_v44, 2  ;;  %v872_v50 = vadd.f32 %v871_v39, %v4195_v62  ;;  %v4264_v39 = vld [vmem:[%s4496_s2 + $0x10] sm:$0xff] }
 0x431   :  { %v1403_v54 = vadd.f32 %v1402_v53, %v1386_v56  ;;  %v1686_v14 = vadd.f32 %v1685_v60, %v1684_v44 }
 0x432   :  { %v594_v58 = vpop.xlane.xlu1 %593 }
 0x433   :  { %v1687_v52 = vrot.slane %v1686_v14, 1 }
 0x435   :  { %v4218_v46 = vadd.f32 %v1687_v52, %v1686_v14 }
 0x436   :  { %v1390_v37 = vpop.xlane.xlu1 %1389 }
 0x43a   :  { %v592_v25 = vpop.xlane.xlu1 %591 }
 0x43b   :  { %v608_v63 = vadd.f32 %v607_v8, %v592_v25 }
 0x43d   :  { %v609_v45 = vadd.f32 %v608_v63, %v594_v58 }
 0x43e   :  { %v1388_v48 = vpop.xlane.xlu1 %1387 }
 0x43f   :  { %v610_v24 = vrot.slane %v609_v45, 4  ;;  %v1404_v28 = vadd.f32 %v1403_v54, %v1388_v48 }
 0x441   :  { %v611_v55 = vadd.f32 %v610_v24, %v609_v45  ;;  %v1405_v18 = vadd.f32 %v1404_v28, %v1390_v37 }
 0x443   :  { %v612_v59 = vrot.slane %v611_v55, 2  ;;  %v1406_v10 = vrot.slane %v1405_v18, 4 }
 0x445   :  { %v613_v33 = vadd.f32 %v612_v59, %v611_v55  ;;  %v1407_v36 = vadd.f32 %v1406_v10, %v1405_v18 }
 0x447   :  { %v614_v47 = vrot.slane %v613_v33, 1  ;;  %v1408_v21 = vrot.slane %v1407_v36, 2 }
 0x449   :  { %v1409_v38 = vadd.f32 %v1408_v21, %v1407_v36  ;;  %v615_v11 = vadd.f32 %v614_v47, %v613_v33 }
 0x44b   :  { %v1410_v1 = vrot.slane %v1409_v38, 1  ;;  %v616_v29 = vmul.f32 0.00024414063, %v615_v11 }
 0x44d   :  { %v1411_v27 = vadd.f32 %v1410_v1, %v1409_v38 }
 0x44f   :  { %v1412_v49 = vmul.f32 0.00024414063, %v1411_v27 }
 0x451   :  { %v4208_v16 = vadd.f32 %v1412_v49, %v616_v29 }
 0x4a3   :  { %v1495_v40 = vpop.xlane.xlu0 %1494 }
 0x4a4   :  { %v1496_v57 = vmul.f32 0.015625, %v1495_v40 }
 0x4a6   :  { %v1497_v6 = vadd.f32 1e-12, %v1496_v57 }
 0x4a7   :  { %v1539_v12 = vpop.xlane.xlu0 %1538 }
 0x4a8   :  { %3693 = vrsqrt.f32 %v1497_v6  ;;  %v1540_v30 = vmul.f32 0.015625, %v1539_v12 }
 0x4aa   :  { %v1541_v7 = vsub.f32 %v3318_v20, %v1540_v30 }
 0x4ac   :  { %3537 = vmatpush3.xpose.msk.msra.mxu0 %vm617_vm0, %v1541_v7  ;;  %v1616_v41 = vmul.f32 %v1541_v7, %v1541_v7 }
 0x4ad   :  { %3541 = vmatprep.subr.mxu0 %v1681_v51 }
 0x4ae   :  { %v1617_v31 = vsel %vm617_vm0, %v1616_v41, 0.0 }
 0x4af   :  { %1618 = vadd.xlane.f32.xlu0 %v1617_v31  ;;  %3539 = vmatmul.mubr.msk.f32.vlgmr.msra.gmra.mrb[18].mxu0 %vm617_vm0, %v1541_v7 }
 0x4b0   :  { %3542 = vmatpush3.msra.mxu0 %v1681_v51 }
 0x4b1   :  { %3603 = vmatprep.subr.mxu0 %v4513_v5 }
 0x4b2   :  { %v3694_v4 = vpop.eup %3693 }
 0x4b3   :  { %1500 = vxpose.xlu1.b32.start.end [1/1] (short) (narrow) %v3694_v4, 8 }
 0x4e9   :  { %v1487_v0 = vpop.f32.mrb[16].mxu0 }
 0x4ea   :  { %v1491_v23 = vmul.f32 0.015625, %v1487_v0  ;;  %v3535_v17 = vpop.f32.mrb[17].mxu0 }
 0x4ec   :  { %v1499_v20 = vmul.f32 %v3694_v4, %v1491_v23  ;;  %v3362_v4 = vld [vmem:[%s4495_s1 + $0x18] sm:$0xff] }
 0x4ed   :  { %v4242_v23 = vmul.f32 %v3362_v4, %v4514_v9 }
 0x533   :  { %v1516_v3 = vpop.trf.xlu1 }
 0x534   :  { %v1535_v19 = vrot.slane %v1516_v3, %v4088_v61 }
 0x536   :  { %v1536_v43 = vmul.f32 %v1535_v19, %v1499_v20 }
 0x53c   :  { %v1619_v22 = vpop.xlane.xlu0 %1618 }
 0x53d   :  { %v1620_v15 = vmul.f32 0.015625, %v1619_v22  ;;  %v873_v22 = vrot.slane %v872_v50, 2 }
 0x53f   :  { %v1621_v56 = vadd.f32 1e-12, %v1620_v15  ;;  %v874_v44 = vadd.f32 %v873_v22, %v872_v50 }
 0x541   :  { %3695 = vrsqrt.f32 %v1621_v56  ;;  %v875_v60 = vrot.slane %v874_v44, 1 }
 0x54b   :  { %v3696_v32 = vpop.eup %3695 }
 0x54c   :  { %1624 = vxpose.xlu0.b32.start.end [1/1] (short) (narrow) %v3696_v32, 8 }
 0x550   :  { %1689 = vxpose.xlu0.b32.start.end [1/1] (short) %v4218_v46, 128 }
 0x582   :  { %v1611_v13 = vpop.f32.mrb[18].mxu0 }
 0x583   :  { %v1615_v26 = vmul.f32 0.015625, %v1611_v13  ;;  %v3540_v34 = vpop.f32.mrb[19].mxu0 }
 0x585   :  { %v1623_v58 = vmul.f32 %v3696_v32, %v1615_v26  ;;  %v876_v32 = vadd.f32 %v875_v60, %v874_v44  ;;  %v2208_v60 = vsel %vm617_vm0, %v4264_v39, 0.0 }
 0x587   :  { %v877_v34 = vmul.f32 0.015625, %v876_v32 }
 0x58d   :  { %1721 = vxpose.xlu0.b32.start.end [1/1] (short) %v1681_v51, 128 }
 0x5cc   :  { %v1640_v42 = vpop.trf.xlu0 }
 0x5cd   :  { %v1659_v37 = vrot.slane %v1640_v42, %v4088_v61 }
 0x5cf   :  { %v1660_v53 = vmul.f32 %v1659_v37, %v1623_v58 }
 0x5d0   :  { %v1705_v8 = vpop.trf.xlu0 }
 0x5d1   :  { %v1661_v25 = vsub.f32 %v1536_v43, %v1660_v53 }
 0x5d3   :  { %v1662_v63 = vand.u32 2147483647, %v1661_v25 }
 0x5d4   :  { %v1706_v45 = vpop.trf.xlu0 }
 0x5d5   :  { %v1663_v54 = vsel %vm108_vm3, %v1662_v63, 0.0 }
 0x5d6   :  { %1664 = vadd.xlane.f32.xlu1 %v1663_v54 }
 0x5d8   :  { %v1707_v48 = vpop.trf.xlu0 }
 0x5dc   :  { %v1708_v24 = vpop.trf.xlu0 }
 0x5e0   :  { %v1709_v28 = vpop.trf.xlu0 }
 0x5e4   :  { %v1710_v55 = vpop.trf.xlu0 }
 0x5e7   :  { %1964 = vperm.xlu1 %3621, %v1705_v8  }
 0x5e8   :  { %v1711_v18 = vpop.trf.xlu0 }
 0x5eb   :  { %1969 = vperm.xlu1 %3621, %v1706_v45  }
 0x5ec   :  { %v1712_v59 = vpop.trf.xlu0 }
 0x5ef   :  { %1974 = vperm.xlu1 %3621, %v1707_v48  }
 0x5f0   :  { %v1713_v10 = vpop.trf.xlu0 }
 0x5f2   :  { %1984 = vperm.xlu0 %3622, %v1709_v28  }
 0x5f3   :  { %1979 = vperm.xlu1 %3621, %v1708_v24  }
 0x5f4   :  { %v1714_v33 = vpop.trf.xlu0 }
 0x5f7   :  { %1989 = vperm.xlu1 %3621, %v1710_v55  }
 0x5f8   :  { %v1715_v36 = vpop.trf.xlu0 }
 0x5fb   :  { %1994 = vperm.xlu1 %3621, %v1711_v18  }
 0x5fc   :  { %v1716_v47 = vpop.trf.xlu0 }
 0x5ff   :  { %1999 = vperm.xlu1 %3621, %v1712_v59  }
 0x600   :  { %v1717_v21 = vpop.trf.xlu0 }
 0x603   :  { %2004 = vperm.xlu1 %3621, %v1713_v10  }
 0x604   :  { %v1718_v38 = vpop.trf.xlu0 }
 0x607   :  { %2009 = vperm.xlu1 %3621, %v1714_v33  }
 0x608   :  { %v1719_v1 = vpop.trf.xlu0 }
 0x60b   :  { %2014 = vperm.xlu1 %3621, %v1715_v36  }
 0x60c   :  { %v1720_v11 = vpop.trf.xlu0 }
 0x60f   :  { %2019 = vperm.xlu1 %3621, %v1716_v47  }
 0x610   :  { %v1737_v27 = vpop.trf.xlu0 }
 0x611   :  { %3543 = vmatprep.mubr.msk.f32.mxu0 %vm108_vm3, %v1737_v27 }
 0x613   :  { %2024 = vperm.xlu1 %3621, %v1717_v21  }
 0x614   :  { %v1738_v29 = vpop.trf.xlu0 }
 0x615   :  { %3544 = vmatmul.mubr.msk.f32.vlgmr.msra.gmra.mrb[20].mxu0 %vm108_vm3, %v1738_v29 }
 0x617   :  { %2029 = vperm.xlu1 %3621, %v1718_v38  }
 0x618   :  { %v1739_v49 = vpop.trf.xlu0 }
 0x619   :  { %3546 = vmatprep.mubr.msk.f32.mxu0 %vm108_vm3, %v1739_v49 }
 0x61b   :  { %2034 = vperm.xlu1 %3621, %v1719_v1  }
 0x61c   :  { %v1740_v40 = vpop.trf.xlu0 }
 0x61d   :  { %3547 = vmatmul.mubr.msk.f32.gmra.mrb[22].mxu0 %vm108_vm3, %v1740_v40 }
 0x61f   :  { %2039 = vperm.xlu1 %3621, %v1720_v11  }
 0x620   :  { %v1741_v57 = vpop.trf.xlu0 }
 0x621   :  { %3549 = vmatprep.mubr.msk.f32.mxu0 %vm108_vm3, %v1741_v57 }
 0x624   :  { %v1742_v6 = vpop.trf.xlu0 }
 0x625   :  { %3550 = vmatmul.mubr.msk.f32.gmra.mrb[24].mxu0 %vm108_vm3, %v1742_v6 }
 0x628   :  { %v1743_v12 = vpop.trf.xlu0 }
 0x629   :  { %3552 = vmatprep.mubr.msk.f32.mxu0 %vm108_vm3, %v1743_v12 }
 0x62c   :  { %v1744_v2 = vpop.trf.xlu0 }
 0x62d   :  { %3553 = vmatmul.mubr.msk.f32.gmra.mrb[26].mxu0 %vm108_vm3, %v1744_v2 }
 0x630   :  { %v1745_v30 = vpop.trf.xlu0 }
 0x631   :  { %3555 = vmatprep.mubr.msk.f32.mxu0 %vm108_vm3, %v1745_v30 }
 0x634   :  { %v1746_v7 = vpop.trf.xlu0 }
 0x635   :  { %3556 = vmatmul.mubr.msk.f32.gmra.mrb[28].mxu0 %vm108_vm3, %v1746_v7 }
 0x638   :  { %v1747_v51 = vpop.trf.xlu0 }
 0x639   :  { %3558 = vmatprep.mubr.msk.f32.mxu0 %vm108_vm3, %v1747_v51 }
 0x63c   :  { %v1748_v41 = vpop.trf.xlu0 }
 0x63d   :  { %3559 = vmatmul.mubr.msk.f32.gmra.mrb[30].mxu0 %vm108_vm3, %v1748_v41 }
 0x640   :  { %v1749_v31 = vpop.trf.xlu0 }
 0x641   :  { %3561 = vmatprep.mubr.msk.f32.mxu0 %vm108_vm3, %v1749_v31 }
 0x644   :  { %v1750_v0 = vpop.trf.xlu0 }
 0x645   :  { %3562 = vmatmul.mubr.msk.f32.gmra.mrb[32].mxu0 %vm108_vm3, %v1750_v0 }
 0x648   :  { %v1751_v17 = vpop.trf.xlu0  ;;  %2516 = vxpose.xlu1.b32.start.end [1/1] (short) %v4242_v23, 128 }
 0x649   :  { %3564 = vmatprep.mubr.msk.f32.mxu0 %vm108_vm3, %v1751_v17 }
 0x64c   :  { %v1752_v20 = vpop.trf.xlu0 }
 0x64d   :  { %3565 = vmatmul.mubr.msk.f32.gmra.mrb[34].mxu0 %vm108_vm3, %v1752_v20 }
 0x64e   :  { %3605 = vmatprep.mubr.msk.f32.mxu0 %vm3819_vm4, %v4513_v5 }
 0x663   :  { %v1665_v15 = vpop.xlane.xlu1 %1664 }
 0x664   :  { %v1666_v9 = vrot.slane %v1665_v15, 4 }
 0x666   :  { %v1667_v56 = vadd.f32 %v1666_v9, %v1665_v15 }
 0x667   :  { %v1965_v19 = vpop.permute.xlu1 %1964 }
 0x668   :  { %v1668_v14 = vrot.slane %v1667_v56, 2 }
 0x66a   :  { %v1669_v52 = vadd.f32 %v1668_v14, %v1667_v56 }
 0x66b   :  { %v1970_v42 = vpop.permute.xlu1 %1969 }
 0x66c   :  { %v1670_v13 = vrot.slane %v1669_v52, 1 }
 0x66e   :  { %v1671_v26 = vadd.f32 %v1670_v13, %v1669_v52  ;;  %v4272_v13 = vld [vmem:[%s4497_s3 + $0x10] sm:$0xff] }
 0x66f   :  { %v1975_v37 = vpop.permute.xlu1 %1974 }
 0x670   :  { %v1672_v58 = vmul.f32 0.015625, %v1671_v26 }
 0x671   :  { %v1985_v30 = vpop.permute.xlu0 %1984 }
 0x672   :  { %v4251_v3 = vadd.f32 %v1672_v58, %v877_v34 }
 0x673   :  { %v1980_v43 = vpop.permute.xlu1 %1979 }
 0x677   :  { %v1990_v62 = vpop.permute.xlu1 %1989 }
 0x67b   :  { %v1995_v45 = vpop.permute.xlu1 %1994 }
 0x67f   :  { %v2000_v59 = vpop.permute.xlu1 %1999 }
 0x683   :  { %v4256_v27 = vpop.permute.xlu1 %2004 }
 0x687   :  { %v2010_v4 = vpop.permute.xlu1 %2009 }
 0x68b   :  { %v2015_v34 = vpop.permute.xlu1 %2014 }
 0x6e8   :  { %v3545_v53 = vpop.f32.mrb[20].mxu0 }
 0x6e9   :  { %v1867_v8 = vpop.f32.mrb[21].mxu0  ;;  %v1947_v25 = vmul.f32 2.0, %v3545_v53 }
 0x6ea   :  { %v1946_v63 = vmul.f32 2.0, %v1867_v8 }
 0x6eb   :  { %v2043_v48 = vsub.f32 %v1947_v25, %v1970_v42 }
 0x6ec   :  { %v2042_v54 = vsub.f32 %v1946_v63, %v1965_v19  ;;  %v2332_v19 = vsel %vm617_vm0, %v4272_v13, 0.0 }
 0x6ed   :  { %v2059_v10 = vsub.f32 %v2043_v48, %v4218_v46 }
 0x6ee   :  { %v2058_v24 = vsub.f32 %v2042_v54, %v4218_v46  ;;  %v2020_v54 = vpop.permute.xlu1 %2019 }
 0x6ef   :  { %v2075_v38 = vmin.f32 %v2059_v10, 0.0 }
 0x6f0   :  { %v2074_v28 = vmin.f32 %v2058_v24, 0.0  ;;  %v3548_v55 = vpop.f32.mrb[22].mxu0 }
 0x6f1   :  { %v1877_v18 = vpop.f32.mrb[23].mxu0  ;;  %v1949_v36 = vmul.f32 2.0, %v3548_v55  ;;  %v2092_v57 = vmul.f32 1.442695, %v2075_v38 }
 0x6f2   :  { %v2090_v33 = vmul.f32 1.442695, %v2074_v28  ;;  %v1948_v47 = vmul.f32 2.0, %v1877_v18 }
 0x6f3   :  { %v2045_v1 = vsub.f32 %v1949_v36, %v1980_v43 }
 0x6f4   :  { %3697 = vpow2.f32 %v2090_v33  ;;  %v2044_v21 = vsub.f32 %v1948_v47, %v1975_v37 }
 0x6f5   :  { %v2061_v6 = vsub.f32 %v2045_v1, %v4218_v46  ;;  %3699 = vpow2.f32 %v2092_v57 }
 0x6f6   :  { %v2060_v11 = vsub.f32 %v2044_v21, %v4218_v46 }
 0x6f7   :  { %v2077_v0 = vmin.f32 %v2061_v6, 0.0 }
 0x6f8   :  { %v3551_v29 = vpop.f32.mrb[24].mxu0  ;;  %v2076_v12 = vmin.f32 %v2060_v11, 0.0 }
 0x6f9   :  { %v1951_v49 = vmul.f32 2.0, %v3551_v29  ;;  %v1887_v40 = vpop.f32.mrb[25].mxu0  ;;  %v2096_v14 = vmul.f32 1.442695, %v2077_v0  ;;  %v2025_v29 = vpop.permute.xlu1 %2024 }
 0x6fa   :  { %v1950_v2 = vmul.f32 2.0, %v1887_v40  ;;  %v2094_v17 = vmul.f32 1.442695, %v2076_v12 }
 0x6fb   :  { %v2047_v7 = vsub.f32 %v1951_v49, %v1990_v62 }
 0x6fc   :  { %v2046_v51 = vsub.f32 %v1950_v2, %v1985_v30  ;;  %3701 = vpow2.f32 %v2094_v17 }
 0x6fd   :  { %v2063_v41 = vsub.f32 %v2047_v7, %v4218_v46 }
 0x6fe   :  { %v3698_v31 = vpop.eup %3697  ;;  %v2062_v20 = vsub.f32 %v2046_v51, %v4218_v46 }
 0x6ff   :  { %v2079_v50 = vmin.f32 %v2063_v41, 0.0  ;;  %v2122_v22 = vmul.f32 %v3698_v31, %v4007_v35  ;;  %v3700_v62 = vpop.eup %3699 }
 0x700   :  { %v3554_v15 = vpop.f32.mrb[26].mxu0  ;;  %v2078_v52 = vmin.f32 %v2062_v20, 0.0  ;;  %v2123_v55 = vmul.f32 %v3700_v62, %v4007_v35 }
 0x701   :  { %v2100_v44 = vmul.f32 1.442695, %v2079_v50  ;;  %v1953_v9 = vmul.f32 2.0, %v3554_v15  ;;  %v1897_v56 = vpop.f32.mrb[27].mxu0  ;;  %2154 = vadd.xlane.f32.xlu1 %v2122_v22 }
 0x702   :  { %v1952_v32 = vmul.f32 2.0, %v1897_v56  ;;  %v2098_v42 = vmul.f32 1.442695, %v2078_v52 }
 0x703   :  { %3703 = vpow2.f32 %v2100_v44  ;;  %v2049_v26 = vsub.f32 %v1953_v9, %v2000_v59 }
 0x704   :  { %v2048_v58 = vsub.f32 %v1952_v32, %v1995_v45  ;;  %3705 = vpow2.f32 %v2096_v14 }
 0x705   :  { %2209 = vadd.xlane.f32.xlu1 %v2208_v60  ;;  %v2065_v37 = vsub.f32 %v2049_v26, %v4218_v46  ;;  %3707 = vpow2.f32 %v2098_v42 }
 0x706   :  { %v2064_v43 = vsub.f32 %v2048_v58, %v4218_v46  ;;  %v3702_v18 = vpop.eup %3701 }
 0x707   :  { %v2081_v48 = vmin.f32 %v2065_v37, 0.0  ;;  %v2124_v1 = vmul.f32 %v3702_v18, %v4007_v35 }
 0x708   :  { %v2080_v53 = vmin.f32 %v2064_v43, 0.0  ;;  %v3557_v8 = vpop.f32.mrb[28].mxu0 }
 0x709   :  { %v1955_v25 = vmul.f32 2.0, %v3557_v8  ;;  %v1907_v63 = vpop.f32.mrb[29].mxu0  ;;  %2333 = vadd.xlane.f32.xlu1 %v2332_v19  ;;  %v2104_v36 = vmul.f32 1.442695, %v2081_v48 }
 0x70a   :  { %v2102_v45 = vmul.f32 1.442695, %v2080_v53  ;;  %v1954_v24 = vmul.f32 2.0, %v1907_v63 }
 0x70b   :  { %v2051_v28 = vsub.f32 %v1955_v25, %v2010_v4  ;;  %v2030_v4 = vpop.permute.xlu1 %2029 }
 0x70c   :  { %v2050_v59 = vsub.f32 %v1954_v24, %v4256_v27  ;;  %3709 = vpow2.f32 %v2102_v45 }
 0x70d   :  { %v3704_v10 = vpop.eup %3703  ;;  %v2067_v33 = vsub.f32 %v2051_v28, %v4218_v46  ;;  %2156 = vadd.xlane.f32.xlu1 %v2123_v55  ;;  %3711 = vpow2.f32 %v2104_v36 }
 0x70e   :  { %v2066_v47 = vsub.f32 %v2050_v59, %v4218_v46  ;;  %v2127_v21 = vmul.f32 %v3704_v10, %v4007_v35  ;;  %v3706_v11 = vpop.eup %3705 }
 0x70f   :  { %v2083_v38 = vmin.f32 %v2067_v33, 0.0  ;;  %v2125_v7 = vmul.f32 %v3706_v11, %v4007_v35  ;;  %v3708_v51 = vpop.eup %3707 }
 0x710   :  { %v2082_v49 = vmin.f32 %v2066_v47, 0.0  ;;  %v3560_v40 = vpop.f32.mrb[30].mxu0  ;;  %2164 = vadd.xlane.f32.xlu0 %v2127_v21  ;;  %v2126_v20 = vmul.f32 %v3708_v51, %v4007_v35 }
 0x711   :  { %v1957_v57 = vmul.f32 2.0, %v3560_v40  ;;  %v1917_v27 = vpop.f32.mrb[31].mxu0  ;;  %2158 = vadd.xlane.f32.xlu1 %v2124_v1  ;;  %v2108_v6 = vmul.f32 1.442695, %v2083_v38 }
 0x712   :  { %v2106_v12 = vmul.f32 1.442695, %v2082_v49  ;;  %v1956_v2 = vmul.f32 2.0, %v1917_v27 }
 0x713   :  { %v2053_v30 = vsub.f32 %v1957_v57, %v2020_v54 }
 0x714   :  { %3713 = vpow2.f32 %v2106_v12  ;;  %v2052_v41 = vsub.f32 %v1956_v2, %v2015_v34  ;;  %v2035_v34 = vpop.permute.xlu1 %2034 }
 0x715   :  { %v2069_v31 = vsub.f32 %v2053_v30, %v4218_v46  ;;  %2160 = vadd.xlane.f32.xlu1 %v2125_v7  ;;  %3715 = vpow2.f32 %v2108_v6 }
 0x716   :  { %v2068_v0 = vsub.f32 %v2052_v41, %v4218_v46  ;;  %v3710_v50 = vpop.eup %3709 }
 0x717   :  { %v2085_v17 = vmin.f32 %v2069_v31, 0.0  ;;  %v2128_v32 = vmul.f32 %v3710_v50, %v4007_v35  ;;  %v3712_v26 = vpop.eup %3711 }
 0x718   :  { %v2084_v22 = vmin.f32 %v2068_v0, 0.0  ;;  %v3563_v15 = vpop.f32.mrb[32].mxu0  ;;  %v2129_v62 = vmul.f32 %v3712_v26, %v4007_v35  ;;  %v2040_v24 = vpop.permute.xlu1 %2039 }
 0x719   :  { %v1959_v44 = vmul.f32 2.0, %v3563_v15  ;;  %v1927_v9 = vpop.f32.mrb[33].mxu0  ;;  %2162 = vadd.xlane.f32.xlu1 %v2126_v20  ;;  %v2112_v56 = vmul.f32 1.442695, %v2085_v17  ;;  %v4305_v15 = vld [vmem:[%s4496_s2 + $0x18] sm:$0xff] }
 0x71a   :  { %v2110_v60 = vmul.f32 1.442695, %v2084_v22  ;;  %v1958_v14 = vmul.f32 2.0, %v1927_v9 }
 0x71b   :  { %v2055_v52 = vsub.f32 %v1959_v44, %v2030_v4 }
 0x71c   :  { %3717 = vpow2.f32 %v2110_v60  ;;  %v2054_v58 = vsub.f32 %v1958_v14, %v2025_v29 }
 0x71d   :  { %v2071_v19 = vsub.f32 %v2055_v52, %v4218_v46  ;;  %2166 = vadd.xlane.f32.xlu1 %v2128_v32  ;;  %3719 = vpow2.f32 %v2112_v56  ;;  %v3003_v56 = vsel %vm617_vm0, %v4305_v15, 0.0 }
 0x71e   :  { %v3714_v42 = vpop.eup %3713  ;;  %v2070_v37 = vsub.f32 %v2054_v58, %v4218_v46 }
 0x71f   :  { %v2087_v43 = vmin.f32 %v2071_v19, 0.0  ;;  %v2130_v53 = vmul.f32 %v3714_v42, %v4007_v35  ;;  %v3716_v8 = vpop.eup %3715 }
 0x720   :  { %v2086_v25 = vmin.f32 %v2070_v37, 0.0  ;;  %v3566_v63 = vpop.f32.mrb[34].mxu0  ;;  %v2131_v10 = vmul.f32 %v3716_v8, %v4007_v35 }
 0x721   :  { %v2116_v54 = vmul.f32 1.442695, %v2087_v43  ;;  %v1961_v48 = vmul.f32 2.0, %v3566_v63  ;;  %v1937_v45 = vpop.f32.mrb[35].mxu0  ;;  %2168 = vadd.xlane.f32.xlu1 %v2129_v62  ;;  %v2146_v59 = vmul.f32 -1.0, %v2130_v53 }
 0x722   :  { %v2114_v28 = vmul.f32 1.442695, %v2086_v25  ;;  %v1960_v55 = vmul.f32 2.0, %v1937_v45  ;;  %v2147_v1 = vmul.f32 -1.0, %v2131_v10 }
 0x723   :  { %3721 = vpow2.f32 %v2116_v54  ;;  %v2057_v18 = vsub.f32 %v1961_v48, %v2040_v24 }
 0x724   :  { %3723 = vpow2.f32 %v2114_v28  ;;  %v2056_v33 = vsub.f32 %v1960_v55, %v2035_v34  ;;  %v4317_v28 = vld [vmem:[%s4497_s3 + $0x18] sm:$0xff]  ;;  %s3821_s3 = smov [#allocation3]  }
 0x725   :  { %v2073_v36 = vsub.f32 %v2057_v18, %v4218_v46  ;;  %2170 = vadd.xlane.f32.xlu1 %v2146_v59  ;;  %v3127_v10 = vsel %vm617_vm0, %v4317_v28, 0.0  ;;  %s3274_s17 = sshll.u32 %s3821_s3, 4  ;;  %s3275_s17 = int_to_ptr.vmem [resolvable:$true] %s3274_s17 }
 0x726   :  { %v3718_v47 = vpop.eup %3717  ;;  %v2072_v21 = vsub.f32 %v2056_v33, %v4218_v46  ;;  %v2532_v46 = vpop.trf.xlu1  ;;  %s3769_s18 = scalar_lea.vmem %s3275_s17, 16  ;;  %s3773_s19 = scalar_lea.vmem %s3275_s17, 32 }
 0x727   :  { %v2089_v38 = vmin.f32 %v2073_v36, 0.0  ;;  %v2132_v11 = vmul.f32 %v3718_v47, %v4007_v35  ;;  %v3720_v29 = vpop.eup %3719  ;;  %p3770_p0 = scmp.ne.s32.totalorder %s3275_s17, %s3769_s18  ;;  %p3774_p1 = scmp.lt.s32.totalorder %s3275_s17, %s3275_s17 }
 0x728   :  { %v2088_v49 = vmin.f32 %v2072_v21, 0.0  ;;  %v2133_v6 = vmul.f32 %v3720_v29, %v4007_v35  ;;  %p3775_p2 = scmp.lt.s32.totalorder %s3773_s19, %s3769_s18 }
 0x729   :  { %v2120_v40 = vmul.f32 1.442695, %v2089_v38  ;;  %2172 = vadd.xlane.f32.xlu1 %v2147_v1  ;;  %v2148_v27 = vmul.f32 -1.0, %v2132_v11 }
 0x72a   :  { %v2118_v57 = vmul.f32 1.442695, %v2088_v49  ;;  %v2149_v7 = vmul.f32 -1.0, %v2133_v6  ;;  %v2533_v4 = vpop.trf.xlu1  ;;  %p3776_p3 = por %p3775_p2, %p3774_p1 }
 0x72b   :  { %3725 = vpow2.f32 %v2120_v40 }
 0x72c   :  { %3727 = vpow2.f32 %v2118_v57  ;;  %p3777_p4 = pnand %p3776_p3, %p3770_p0 }
 0x72d   :  { %v3722_v12 = vpop.eup %3721  ;;  %2174 = vadd.xlane.f32.xlu1 %v2148_v27 }
 0x72e   :  { %v3724_v2 = vpop.eup %3723  ;;  %v2135_v30 = vmul.f32 %v3722_v12, %v4007_v35  ;;  %v2534_v9 = vpop.trf.xlu1 }
 0x72f   :  { %v2134_v51 = vmul.f32 %v3724_v2, %v4007_v35 }
 0x730   :  { %v2151_v41 = vmul.f32 -1.0, %v2135_v30 }
 0x731   :  { %2176 = vadd.xlane.f32.xlu1 %v2149_v7  ;;  %v2150_v31 = vmul.f32 -1.0, %v2134_v51 }
 0x732   :  { %2180 = vadd.xlane.f32.xlu0 %v2151_v41  ;;  %v2535_v60 = vpop.trf.xlu1 }
 0x735   :  { %v3726_v0 = vpop.eup %3725  ;;  %2178 = vadd.xlane.f32.xlu1 %v2150_v31 }
 0x736   :  { %v3728_v17 = vpop.eup %3727  ;;  %v2137_v20 = vmul.f32 %v3726_v0, %v4007_v35  ;;  %v2536_v14 = vpop.trf.xlu1 }
 0x737   :  { %v2136_v50 = vmul.f32 %v3728_v17, %v4007_v35 }
 0x738   :  { %v2153_v22 = vmul.f32 -1.0, %v2137_v20 }
 0x739   :  { %v2152_v44 = vmul.f32 -1.0, %v2136_v50 }
 0x73a   :  { %2184 = vadd.xlane.f32.xlu0 %v2153_v22  ;;  %v2537_v52 = vpop.trf.xlu1 }
 0x73b   :  { %2182 = vadd.xlane.f32.xlu1 %v2152_v44 }
 0x73e   :  { %3004 = vadd.xlane.f32.xlu0 %v3003_v56  ;;  %v2538_v32 = vpop.trf.xlu1 }
 0x742   :  { %v2539_v26 = vpop.trf.xlu1 }
 0x746   :  { %v2540_v34 = vpop.trf.xlu1 }
 0x74a   :  { %v2541_v58 = vpop.trf.xlu1 }
 0x74e   :  { %v2542_v19 = vpop.trf.xlu1 }
 0x752   :  { %v2543_v42 = vpop.trf.xlu1 }
 0x756   :  { %v2544_v37 = vpop.trf.xlu1 }
 0x75a   :  { %v2545_v43 = vpop.trf.xlu1 }
 0x75e   :  { %v2546_v62 = vpop.trf.xlu1 }
 0x762   :  { %v4309_v53 = vpop.trf.xlu1 }
 0x78e   :  { %v2155_v8 = vpop.xlane.xlu1 %2154 }
 0x792   :  { %v2210_v25 = vpop.xlane.xlu1 %2209 }
 0x793   :  { %v2211_v63 = vmul.f32 0.015625, %v2210_v25 }
 0x795   :  { %v2212_v54 = vsub.f32 %v4264_v39, %v2211_v63 }
 0x796   :  { %v2334_v48 = vpop.xlane.xlu1 %2333 }
 0x797   :  { %v2335_v45 = vmul.f32 0.015625, %v2334_v48  ;;  %3568 = vmatpush3.xpose.msk.msra.mxu1 %vm617_vm0, %v2212_v54  ;;  %v2287_v24 = vmul.f32 %v2212_v54, %v2212_v54 }
 0x798   :  { %3572 = vmatprep.subr.mxu1 %v4513_v5 }
 0x799   :  { %v2336_v55 = vsub.f32 %v4272_v13, %v2335_v45  ;;  %v2288_v18 = vsel %vm617_vm0, %v2287_v24, 0.0 }
 0x79a   :  { %2289 = vadd.xlane.f32.xlu1 %v2288_v18  ;;  %3570 = vmatmul.mubr.msk.f32.vlgmr.msra.gmra.mrb[20].mxu1 %vm617_vm0, %v2212_v54  ;;  %v2157_v39 = vpop.xlane.xlu1 %2156 }
 0x79b   :  { %v2186_v59 = vadd.f32 %v2157_v39, %v2155_v8  ;;  %3573 = vmatpush3.xpose.msk.msra.mxu1 %vm617_vm0, %v2336_v55  ;;  %3574 = vmatprep.mubr.msk.f32.mxu1 %vm3819_vm4, %v4513_v5  ;;  %v2411_v33 = vmul.f32 %v2336_v55, %v2336_v55 }
 0x79c   :  { %3577 = vmatprep.subr.mxu1 %v4242_v23 }
 0x79d   :  { %v2412_v13 = vsel %vm617_vm0, %v2411_v33, 0.0  ;;  %v2165_v29 = vpop.xlane.xlu0 %2164 }
 0x79e   :  { %3128 = vadd.xlane.f32.xlu1 %v3127_v10  ;;  %2413 = vadd.xlane.f32.xlu0 %v2412_v13  ;;  %v2159_v36 = vpop.xlane.xlu1 %2158 }
 0x79f   :  { %3575 = vmatmul.mubr.msk.f32.vlgmr.msra.gmra.mrb[22].mxu1 %vm617_vm0, %v2336_v55  ;;  %v2187_v47 = vadd.f32 %v2186_v59, %v2159_v36 }
 0x7a0   :  { %3578 = vmatpush3.msra.mxu1 %v4242_v23  ;;  %3579 = vmatprep.mubr.msk.f32.mxu1 %vm108_vm3, %v2532_v46  ;;  %v2477_v46 = vmul.f32 %v4242_v23, %v4242_v23 }
 0x7a2   :  { %v2161_v21 = vpop.xlane.xlu1 %2160  ;;  %v2478_v41 = vrot.slane %v2477_v46, 4 }
 0x7a3   :  { %3580 = vmatmul.mubr.msk.f32.vlgmr.msra.gmra.mrb[24].mxu1 %vm108_vm3, %v2533_v4  ;;  %v2188_v38 = vadd.f32 %v2187_v47, %v2161_v21 }
 0x7a4   :  { %3582 = vmatprep.mubr.msk.f32.mxu1 %vm108_vm3, %v2534_v9  ;;  %v2479_v0 = vadd.f32 %v2478_v41, %v2477_v46 }
 0x7a6   :  { %v2163_v1 = vpop.xlane.xlu1 %2162  ;;  %v2480_v23 = vrot.slane %v2479_v0, 2 }
 0x7a7   :  { %3583 = vmatmul.mubr.msk.f32.gmra.mrb[26].mxu1 %vm108_vm3, %v2535_v60  ;;  %v2189_v11 = vadd.f32 %v2188_v38, %v2163_v1 }
 0x7a8   :  { %3585 = vmatprep.mubr.msk.f32.mxu1 %vm108_vm3, %v2536_v14  ;;  %v2481_v9 = vadd.f32 %v2480_v23, %v2479_v0 }
 0x7a9   :  { %v2190_v49 = vadd.f32 %v2189_v11, %v2165_v29 }
 0x7aa   :  { %v2167_v40 = vpop.xlane.xlu1 %2166 }
 0x7ab   :  { %3586 = vmatmul.mubr.msk.f32.gmra.mrb[28].mxu1 %vm108_vm3, %v2537_v52  ;;  %v2191_v57 = vadd.f32 %v2190_v49, %v2167_v40  ;;  %v2482_v52 = vrot.slane %v2481_v9, 1 }
 0x7ac   :  { %3588 = vmatprep.mubr.msk.f32.mxu1 %vm108_vm3, %v2538_v32 }
 0x7ae   :  { %v2169_v27 = vpop.xlane.xlu1 %2168 }
 0x7af   :  { %3589 = vmatmul.mubr.msk.f32.gmra.mrb[30].mxu1 %vm108_vm3, %v2539_v26  ;;  %v2192_v6 = vadd.f32 %v2191_v57, %v2169_v27 }
 0x7b0   :  { %3591 = vmatprep.mubr.msk.f32.mxu1 %vm108_vm3, %v2540_v34 }
 0x7b2   :  { %v2171_v12 = vpop.xlane.xlu1 %2170 }
 0x7b3   :  { %3592 = vmatmul.mubr.msk.f32.gmra.mrb[32].mxu1 %vm108_vm3, %v2541_v58  ;;  %v2193_v2 = vadd.f32 %v2192_v6, %v2171_v12 }
 0x7b4   :  { %3594 = vmatprep.mubr.msk.f32.mxu1 %vm108_vm3, %v2542_v19 }
 0x7b6   :  { %v2173_v30 = vpop.xlane.xlu1 %2172 }
 0x7b7   :  { %3595 = vmatmul.mubr.msk.f32.gmra.mrb[34].mxu1 %vm108_vm3, %v2543_v42  ;;  %v2194_v7 = vadd.f32 %v2193_v2, %v2173_v30  ;;  %v4351_v42 = vadd.f32 %v2482_v52, %v2481_v9 }
 0x7b8   :  { %3597 = vmatprep.mubr.msk.f32.mxu1 %vm108_vm3, %v2544_v37 }
 0x7ba   :  { %v2175_v51 = vpop.xlane.xlu1 %2174 }
 0x7bb   :  { %3598 = vmatmul.mubr.msk.f32.gmra.mrb[36].mxu1 %vm108_vm3, %v2545_v43  ;;  %v2195_v31 = vadd.f32 %v2194_v7, %v2175_v51 }
 0x7bc   :  { %3600 = vmatprep.mubr.msk.f32.mxu1 %vm108_vm3, %v2546_v62 }
 0x7be   :  { %v2177_v4 = vpop.xlane.xlu1 %2176 }
 0x7bf   :  { %3601 = vmatmul.mubr.msk.f32.gmra.mrb[38].mxu1 %vm108_vm3, %v4309_v53  ;;  %v2196_v17 = vadd.f32 %v2195_v31, %v2177_v4  ;;  %v2181_v50 = vpop.xlane.xlu0 %2180 }
 0x7c2   :  { %v2179_v20 = vpop.xlane.xlu1 %2178 }
 0x7c3   :  { %v2197_v22 = vadd.f32 %v2196_v17, %v2179_v20 }
 0x7c5   :  { %v2198_v44 = vadd.f32 %v2197_v22, %v2181_v50 }
 0x7c7   :  { %v2185_v56 = vpop.xlane.xlu0 %2184 }
 0x7c8   :  { %v2183_v60 = vpop.xlane.xlu1 %2182 }
 0x7c9   :  { %v2199_v14 = vadd.f32 %v2198_v44, %v2183_v60 }
 0x7cb   :  { %v2200_v32 = vadd.f32 %v2199_v14, %v2185_v56  ;;  %v3005_v26 = vpop.xlane.xlu0 %3004 }
 0x7cc   :  { %v3006_v34 = vmul.f32 0.015625, %v3005_v26 }
 0x7cd   :  { %v2201_v58 = vrot.slane %v2200_v32, 4 }
 0x7ce   :  { %v3007_v19 = vsub.f32 %v4305_v15, %v3006_v34 }
 0x7cf   :  { %v2202_v37 = vadd.f32 %v2201_v58, %v2200_v32 }
 0x7d0   :  { %3604 = vmatpush3.xpose.msk.msra.mxu0 %vm617_vm0, %v3007_v19  ;;  %v3082_v10 = vmul.f32 %v3007_v19, %v3007_v19 }
 0x7d1   :  { %v2203_v43 = vrot.slane %v2202_v37, 2  ;;  %2484 = vxpose.xlu1.b32.start.end [1/1] (short) %v4351_v42, 128  ;;  %3608 = vmatprep.subr.mxu0 %v4513_v5 }
 0x7d3   :  { %v2204_v62 = vadd.f32 %v2203_v43, %v2202_v37  ;;  %3606 = vmatmul.mubr.msk.f32.vlgmr.msra.gmra.mrb[36].mxu0 %vm617_vm0, %v3007_v19 }
 0x7d4   :  { %3610 = vmatprep.mubr.msk.f32.mxu0 %vm3819_vm4, %v4513_v5  ;;  %v3083_v5 = vsel %vm617_vm0, %v3082_v10, 0.0 }
 0x7d5   :  { %v2205_v53 = vrot.slane %v2204_v62, 1 }
 0x7d7   :  { %v2206_v8 = vadd.f32 %v2205_v53, %v2204_v62 }
 0x7d9   :  { %v2207_v25 = vmul.f32 0.00024414063, %v2206_v8 }
 0x7db   :  { %v4360_v15 = vadd.f32 %v2207_v25, %v4208_v16 }
 0x827   :  { %v2290_v63 = vpop.xlane.xlu1 %2289 }
 0x828   :  { %v2291_v54 = vmul.f32 0.015625, %v2290_v63 }
 0x82a   :  { %v2292_v48 = vadd.f32 1e-12, %v2291_v54 }
 0x82b   :  { %v2414_v45 = vpop.xlane.xlu0 %2413  ;;  %v3129_v24 = vpop.xlane.xlu1 %3128 }
 0x82c   :  { %3729 = vrsqrt.f32 %v2292_v48  ;;  %v2415_v55 = vmul.f32 0.015625, %v2414_v45  ;;  %v3130_v18 = vmul.f32 0.015625, %v3129_v24 }
 0x82e   :  { %v2416_v39 = vadd.f32 1e-12, %v2415_v55  ;;  %v3131_v59 = vsub.f32 %v4317_v28, %v3130_v18 }
 0x830   :  { %3731 = vrsqrt.f32 %v2416_v39  ;;  %3609 = vmatpush3.xpose.msk.msra.mxu0 %vm617_vm0, %v3131_v59  ;;  %v3206_v48 = vmul.f32 %v3131_v59, %v3131_v59 }
 0x832   :  { %v3207_v24 = vsel %vm617_vm0, %v3206_v48, 0.0 }
 0x833   :  { %3611 = vmatmul.mubr.msk.f32.vlgmr.msra.gmra.mrb[38].mxu0 %vm617_vm0, %v3131_v59 }
 0x834   :  { %3084 = vadd.xlane.f32.xlu1 %v3083_v5 }
 0x836   :  { %v3730_v16 = vpop.eup %3729 }
 0x837   :  { %2295 = vxpose.xlu0.b32.start.end [1/1] (short) (narrow) %v3730_v16, 8 }
 0x83a   :  { %v3732_v33 = vpop.eup %3731 }
 0x83b   :  { %2419 = vxpose.xlu0.b32.start.end [1/1] (short) (narrow) %v3732_v33, 8 }
 0x851   :  { %v2500_v13 = vpop.trf.xlu1 }
 0x855   :  { %v2501_v36 = vpop.trf.xlu1 }
 0x859   :  { %v2502_v47 = vpop.trf.xlu1 }
 0x85d   :  { %v2503_v21 = vpop.trf.xlu1 }
 0x861   :  { %v2504_v38 = vpop.trf.xlu1 }
 0x865   :  { %v2505_v1 = vpop.trf.xlu1 }
 0x869   :  { %v2506_v28 = vpop.trf.xlu1 }
 0x86d   :  { %v2282_v11 = vpop.f32.mrb[20].mxu1  ;;  %v2507_v29 = vpop.trf.xlu1 }
 0x86e   :  { %v2286_v49 = vmul.f32 0.015625, %v2282_v11  ;;  %v3571_v40 = vpop.f32.mrb[21].mxu1 }
 0x870   :  { %v2294_v57 = vmul.f32 %v3730_v16, %v2286_v49 }
 0x871   :  { %v2508_v27 = vpop.trf.xlu1 }
 0x872   :  { %v2406_v6 = vpop.f32.mrb[22].mxu1 }
 0x873   :  { %v2410_v12 = vmul.f32 0.015625, %v2406_v6  ;;  %v3576_v2 = vpop.f32.mrb[23].mxu1 }
 0x875   :  { %v2418_v30 = vmul.f32 %v3732_v33, %v2410_v12  ;;  %v2509_v46 = vpop.trf.xlu1 }
 0x876   :  { %v4366_v7 = vpop.f32.mrb[24].mxu1 }
 0x877   :  { %v4368_v51 = vpop.f32.mrb[25].mxu1 }
 0x878   :  { %v2741_v49 = vmul.f32 2.0, %v4368_v51 }
 0x879   :  { %v2510_v41 = vpop.trf.xlu1 }
 0x87a   :  { %v4370_v31 = vpop.f32.mrb[26].mxu1 }
 0x87b   :  { %v4372_v4 = vpop.f32.mrb[27].mxu1 }
 0x87d   :  { %v2511_v0 = vpop.trf.xlu1 }
 0x87e   :  { %v4374_v17 = vpop.f32.mrb[28].mxu1 }
 0x87f   :  { %v4376_v20 = vpop.f32.mrb[29].mxu1 }
 0x881   :  { %v2512_v23 = vpop.trf.xlu1 }
 0x882   :  { %v4378_v50 = vpop.f32.mrb[30].mxu1 }
 0x883   :  { %v4380_v22 = vpop.f32.mrb[31].mxu1 }
 0x885   :  { %v2513_v44 = vpop.trf.xlu1 }
 0x886   :  { %v4382_v9 = vpop.f32.mrb[32].mxu1  ;;  %2824 = vperm.xlu1 %3621, %v2513_v44  }
 0x887   :  { %v4384_v56 = vpop.f32.mrb[33].mxu1 }
 0x889   :  { %v2514_v39 = vpop.trf.xlu1 }
 0x88a   :  { %v4386_v60 = vpop.f32.mrb[34].mxu1 }
 0x88b   :  { %v4388_v14 = vpop.f32.mrb[35].mxu1 }
 0x88d   :  { %v2515_v59 = vpop.trf.xlu1 }
 0x88e   :  { %v4390_v52 = vpop.f32.mrb[36].mxu1 }
 0x88f   :  { %v4392_v32 = vpop.f32.mrb[37].mxu1 }
 0x892   :  { %v4394_v26 = vpop.f32.mrb[38].mxu1 }
 0x893   :  { %v4396_v34 = vpop.f32.mrb[39].mxu1 }
 0x8a6   :  { %v4398_v58 = vpop.f32.mrb[36].mxu0 }
 0x8a7   :  { %v3607_v19 = vpop.f32.mrb[37].mxu0 }
 0x8b7   :  { %v2311_v37 = vpop.trf.xlu0 }
 0x8b8   :  { %v2330_v43 = vrot.slane %v2311_v37, %v4088_v61 }
 0x8ba   :  { %v2331_v8 = vmul.f32 %v2330_v43, %v2294_v57  ;;  %v2744_v43 = vmul.f32 2.0, %v4370_v31  ;;  %v2746_v31 = vmul.f32 2.0, %v4374_v17 }
 0x8bb   :  { %v2435_v62 = vpop.trf.xlu0 }
 0x8bc   :  { %v2454_v53 = vrot.slane %v2435_v62, %v4088_v61 }
 0x8be   :  { %v2455_v25 = vmul.f32 %v2454_v53, %v2418_v30 }
 0x8c0   :  { %v2456_v63 = vsub.f32 %v2331_v8, %v2455_v25  ;;  %v2742_v25 = vmul.f32 2.0, %v4366_v7 }
 0x8c1   :  { %v3085_v10 = vpop.xlane.xlu1 %3084 }
 0x8c2   :  { %v2457_v54 = vand.u32 2147483647, %v2456_v63  ;;  %v3086_v5 = vmul.f32 0.015625, %v3085_v10  ;;  %v2745_v63 = vmul.f32 2.0, %v4376_v20 }
 0x8c4   :  { %v2458_v45 = vsel %vm108_vm3, %v2457_v54, 0.0  ;;  %v3087_v16 = vadd.f32 1e-12, %v3086_v5 }
 0x8c5   :  { %2459 = vadd.xlane.f32.xlu0 %v2458_v45 }
 0x8c6   :  { %3733 = vrsqrt.f32 %v3087_v16 }
 0x8c9   :  { %3208 = vadd.xlane.f32.xlu0 %v3207_v24 }
 0x8d0   :  { %v4404_v33 = vpop.eup %3733 }
 0x8df   :  { %2759 = vperm.xlu0 %3622, %v2500_v13  }
 0x8e3   :  { %2764 = vperm.xlu0 %3622, %v2501_v36  }
 0x8e7   :  { %2769 = vperm.xlu0 %3622, %v2502_v47  }
 0x8eb   :  { %2774 = vperm.xlu0 %3622, %v2503_v21  }
 0x8ef   :  { %2779 = vperm.xlu0 %3622, %v2504_v38  }
 0x8f3   :  { %2784 = vperm.xlu0 %3622, %v2505_v1  }
 0x8f7   :  { %2789 = vperm.xlu0 %3622, %v2506_v28  }
 0x8fb   :  { %2794 = vperm.xlu0 %3622, %v2507_v29  }
 0x8ff   :  { %2799 = vperm.xlu0 %3622, %v2508_v27  }
 0x903   :  { %2804 = vperm.xlu0 %3622, %v2509_v46  }
 0x906   :  { %v3201_v55 = vpop.f32.mrb[38].mxu0 }
 0x907   :  { %2809 = vperm.xlu0 %3622, %v2510_v41   ;;  %v3612_v18 = vpop.f32.mrb[39].mxu0  ;;  %v3205_v46 = vmul.f32 0.015625, %v3201_v55 }
 0x90b   :  { %2814 = vperm.xlu0 %3622, %v2511_v0  }
 0x90f   :  { %2819 = vperm.xlu0 %3622, %v2512_v23   ;;  %v2743_v23 = vmul.f32 2.0, %v4372_v4 }
 0x913   :  { %2829 = vperm.xlu0 %3622, %v2514_v39  }
 0x917   :  { %2834 = vperm.xlu0 %3622, %v2515_v59  }
 0x935   :  { %3090 = vxpose.xlu0.b32.start.end [1/1] (short) (narrow) %v4404_v33, 8 }
 0x952   :  { %v2460_v13 = vpop.xlane.xlu0 %2459 }
 0x953   :  { %v2461_v36 = vrot.slane %v2460_v13, 4 }
 0x955   :  { %v2462_v47 = vadd.f32 %v2461_v36, %v2460_v13  ;;  %v2747_v13 = vmul.f32 2.0, %v4380_v22 }
 0x956   :  { %v3209_v21 = vpop.xlane.xlu0 %3208 }
 0x957   :  { %v2463_v38 = vrot.slane %v2462_v47, 2  ;;  %v3210_v1 = vmul.f32 0.015625, %v3209_v21 }
 0x959   :  { %v2464_v28 = vadd.f32 %v2463_v38, %v2462_v47  ;;  %v3211_v11 = vadd.f32 1e-12, %v3210_v1 }
 0x95b   :  { %v2465_v29 = vrot.slane %v2464_v28, 1  ;;  %3735 = vrsqrt.f32 %v3211_v11 }
 0x95d   :  { %v2466_v40 = vadd.f32 %v2465_v29, %v2464_v28  ;;  %v2748_v28 = vmul.f32 2.0, %v4378_v50 }
 0x95e   :  { %v2760_v57 = vpop.permute.xlu0 %2759 }
 0x95f   :  { %v2467_v27 = vmul.f32 0.015625, %v2466_v40  ;;  %v2837_v6 = vsub.f32 %v2741_v49, %v2760_v57 }
 0x961   :  { %v2853_v12 = vsub.f32 %v2837_v6, %v4351_v42  ;;  %v4410_v2 = vadd.f32 %v2467_v27, %v4251_v3 }
 0x962   :  { %v2765_v30 = vpop.permute.xlu0 %2764 }
 0x963   :  { %v2869_v41 = vmin.f32 %v2853_v12, 0.0  ;;  %v2838_v48 = vsub.f32 %v2742_v25, %v2765_v30  ;;  %v2749_v12 = vmul.f32 2.0, %v4384_v56 }
 0x965   :  { %v3736_v0 = vpop.eup %3735  ;;  %v2885_v44 = vmul.f32 1.442695, %v2869_v41  ;;  %v2854_v10 = vsub.f32 %v2838_v48, %v4351_v42 }
 0x966   :  { %v4413_v19 = vmul.f32 %v3736_v0, %v3205_v46  ;;  %v2770_v37 = vpop.permute.xlu0 %2769  ;;  %3214 = vxpose.xlu1.b32.start.end [1/1] (short) (narrow) %v3736_v0, 8 }
 0x967   :  { %3737 = vpow2.f32 %v2885_v44  ;;  %v2839_v51 = vsub.f32 %v2743_v23, %v2770_v37  ;;  %v2870_v47 = vmin.f32 %v2854_v10, 0.0  ;;  %v2825_v23 = vpop.permute.xlu1 %2824 }
 0x969   :  { %v2855_v62 = vsub.f32 %v2839_v51, %v4351_v42  ;;  %v2887_v29 = vmul.f32 1.442695, %v2870_v47  ;;  %v2754_v51 = vmul.f32 2.0, %v4390_v52  ;;  %v2753_v47 = vmul.f32 2.0, %v4392_v32 }
 0x96a   :  { %v2775_v53 = vpop.permute.xlu0 %2774 }
 0x96b   :  { %v2871_v3 = vmin.f32 %v2855_v62, 0.0  ;;  %v2840_v8 = vsub.f32 %v2744_v43, %v2775_v53  ;;  %v2750_v62 = vmul.f32 2.0, %v4382_v9  ;;  %v2850_v53 = vsub.f32 %v2754_v51, %v2825_v23 }
 0x96d   :  { %v2889_v54 = vmul.f32 1.442695, %v2871_v3  ;;  %v2856_v4 = vsub.f32 %v2840_v8, %v4351_v42 }
 0x96e   :  { %v2780_v45 = vpop.permute.xlu0 %2779 }
 0x96f   :  { %3739 = vpow2.f32 %v2889_v54  ;;  %v2872_v24 = vmin.f32 %v2856_v4, 0.0  ;;  %v2841_v55 = vsub.f32 %v2745_v63, %v2780_v45  ;;  %v2751_v4 = vmul.f32 2.0, %v4388_v14 }
 0x970   :  { %v2866_v45 = vsub.f32 %v2850_v53, %v4351_v42 }
 0x971   :  { %v3738_v18 = vpop.eup %3737  ;;  %v2891_v39 = vmul.f32 1.442695, %v2872_v24  ;;  %v2857_v59 = vsub.f32 %v2841_v55, %v4351_v42 }
 0x972   :  { %v2785_v5 = vpop.permute.xlu0 %2784  ;;  %v2917_v7 = vmul.f32 %v3738_v18, %v4007_v35 }
 0x973   :  { %3741 = vpow2.f32 %v2891_v39  ;;  %v2873_v20 = vmin.f32 %v2857_v59, 0.0  ;;  %v2842_v16 = vsub.f32 %v2746_v31, %v2785_v5  ;;  %v2752_v39 = vmul.f32 2.0, %v4386_v60 }
 0x974   :  { %2949 = vadd.xlane.f32.xlu0 %v2917_v7  ;;  %v2882_v5 = vmin.f32 %v2866_v45, 0.0 }
 0x975   :  { %v2893_v36 = vmul.f32 1.442695, %v2873_v20  ;;  %v2858_v21 = vsub.f32 %v2842_v16, %v4351_v42 }
 0x976   :  { %v2790_v38 = vpop.permute.xlu0 %2789  ;;  %v2911_v60 = vmul.f32 1.442695, %v2882_v5 }
 0x977   :  { %3743 = vpow2.f32 %v2893_v36  ;;  %v2843_v17 = vsub.f32 %v2747_v13, %v2790_v38  ;;  %v2874_v49 = vmin.f32 %v2858_v21, 0.0 }
 0x978   :  { %3745 = vpow2.f32 %v2887_v29 }
 0x979   :  { %v3740_v1 = vpop.eup %3739  ;;  %v2859_v11 = vsub.f32 %v2843_v17, %v4351_v42  ;;  %v2895_v41 = vmul.f32 1.442695, %v2874_v49 }
 0x97a   :  { %v2795_v40 = vpop.permute.xlu0 %2794  ;;  %v2919_v57 = vmul.f32 %v3740_v1, %v4007_v35 }
 0x97b   :  { %v2875_v27 = vmin.f32 %v2859_v11, 0.0  ;;  %v2844_v6 = vsub.f32 %v2748_v28, %v2795_v40  ;;  %v2755_v40 = vmul.f32 2.0, %v4396_v34 }
 0x97c   :  { %2953 = vadd.xlane.f32.xlu0 %v2919_v57 }
 0x97d   :  { %v3742_v22 = vpop.eup %3741  ;;  %v2897_v30 = vmul.f32 1.442695, %v2875_v27  ;;  %v2860_v46 = vsub.f32 %v2844_v6, %v4351_v42 }
 0x97e   :  { %v2800_v0 = vpop.permute.xlu0 %2799  ;;  %v2920_v50 = vmul.f32 %v3742_v22, %v4007_v35 }
 0x97f   :  { %3747 = vpow2.f32 %v2897_v30  ;;  %v2876_v44 = vmin.f32 %v2860_v46, 0.0  ;;  %v2845_v37 = vsub.f32 %v2749_v12, %v2800_v0  ;;  %v2756_v0 = vmul.f32 2.0, %v4394_v26 }
 0x980   :  { %2955 = vadd.xlane.f32.xlu0 %v2920_v50  ;;  %3749 = vpow2.f32 %v2895_v41 }
 0x981   :  { %v3744_v43 = vpop.eup %3743  ;;  %v2861_v56 = vsub.f32 %v2845_v37, %v4351_v42  ;;  %v2899_v3 = vmul.f32 1.442695, %v2876_v44 }
 0x982   :  { %v2805_v8 = vpop.permute.xlu0 %2804  ;;  %v2921_v25 = vmul.f32 %v3744_v43, %v4007_v35  ;;  %v3746_v18 = vpop.eup %3745 }
 0x983   :  { %v2877_v63 = vmin.f32 %v2861_v56, 0.0  ;;  %v2846_v54 = vsub.f32 %v2750_v62, %v2805_v8  ;;  %3751 = vpow2.f32 %v2899_v3  ;;  %v2918_v13 = vmul.f32 %v3746_v18, %v4007_v35 }
 0x984   :  { %2957 = vadd.xlane.f32.xlu0 %v2921_v25 }
 0x985   :  { %v2901_v48 = vmul.f32 1.442695, %v2877_v63  ;;  %v2862_v52 = vsub.f32 %v2846_v54, %v4351_v42 }
 0x986   :  { %v2810_v9 = vpop.permute.xlu0 %2809 }
 0x987   :  { %3753 = vpow2.f32 %v2901_v48  ;;  %v2878_v24 = vmin.f32 %v2862_v52, 0.0  ;;  %v2847_v55 = vsub.f32 %v2751_v4, %v2810_v9 }
 0x989   :  { %v3748_v31 = vpop.eup %3747  ;;  %v2903_v59 = vmul.f32 1.442695, %v2878_v24  ;;  %v2863_v10 = vsub.f32 %v2847_v55, %v4351_v42 }
 0x98a   :  { %v2815_v7 = vpop.permute.xlu0 %2814  ;;  %v2923_v14 = vmul.f32 %v3748_v31, %v4007_v35  ;;  %v3750_v36 = vpop.eup %3749 }
 0x98b   :  { %3755 = vpow2.f32 %v2903_v59  ;;  %v2879_v20 = vmin.f32 %v2863_v10, 0.0  ;;  %v2848_v16 = vsub.f32 %v2752_v39, %v2815_v7  ;;  %v2922_v11 = vmul.f32 %v3750_v36, %v4007_v35 }
 0x98c   :  { %2961 = vadd.xlane.f32.xlu0 %v2923_v14  ;;  %v3081_v7 = vmul.f32 0.015625, %v4398_v58 }
 0x98d   :  { %v2905_v21 = vmul.f32 1.442695, %v2879_v20  ;;  %v2864_v38 = vsub.f32 %v2848_v16, %v4351_v42  ;;  %2951 = vadd.xlane.f32.xlu1 %v2918_v13  ;;  %v3752_v29 = vpop.eup %3751 }
 0x98e   :  { %v2820_v17 = vpop.permute.xlu0 %2819  ;;  %v2924_v30 = vmul.f32 %v3752_v29, %v4007_v35  ;;  %v3089_v16 = vmul.f32 %v4404_v33, %v3081_v7 }
 0x98f   :  { %3757 = vpow2.f32 %v2905_v21  ;;  %v2880_v1 = vmin.f32 %v2864_v38, 0.0  ;;  %v2849_v28 = vsub.f32 %v2753_v47, %v2820_v17 }
 0x990   :  { %3759 = vpow2.f32 %v2911_v60 }
 0x991   :  { %v3754_v49 = vpop.eup %3753  ;;  %v2907_v57 = vmul.f32 1.442695, %v2880_v1  ;;  %v2865_v27 = vsub.f32 %v2849_v28, %v4351_v42  ;;  %2959 = vadd.xlane.f32.xlu1 %v2922_v11 }
 0x992   :  { %v2830_v32 = vpop.permute.xlu0 %2829  ;;  %v2925_v6 = vmul.f32 %v3754_v49, %v4007_v35 }
 0x993   :  { %3761 = vpow2.f32 %v2907_v57  ;;  %v2881_v22 = vmin.f32 %v2865_v27, 0.0  ;;  %v2851_v12 = vsub.f32 %v2755_v40, %v2830_v32 }
 0x994   :  { %v2941_v46 = vmul.f32 -1.0, %v2925_v6 }
 0x995   :  { %v3756_v41 = vpop.eup %3755  ;;  %v2909_v50 = vmul.f32 1.442695, %v2881_v22  ;;  %v2867_v34 = vsub.f32 %v2851_v12, %v4351_v42  ;;  %2963 = vadd.xlane.f32.xlu1 %v2924_v30 }
 0x996   :  { %v2835_v23 = vpop.permute.xlu0 %2834  ;;  %2965 = vadd.xlane.f32.xlu0 %v2941_v46  ;;  %v2926_v44 = vmul.f32 %v3756_v41, %v4007_v35 }
 0x997   :  { %3763 = vpow2.f32 %v2909_v50  ;;  %v2883_v37 = vmin.f32 %v2867_v34, 0.0  ;;  %v2852_v51 = vsub.f32 %v2756_v0, %v2835_v23 }
 0x998   :  { %v2942_v43 = vmul.f32 -1.0, %v2926_v44 }
 0x999   :  { %v3758_v62 = vpop.eup %3757  ;;  %v2913_v56 = vmul.f32 1.442695, %v2883_v37  ;;  %v2868_v53 = vsub.f32 %v2852_v51, %v4351_v42 }
 0x99a   :  { %2967 = vadd.xlane.f32.xlu1 %v2942_v43  ;;  %v2927_v3 = vmul.f32 %v3758_v62, %v4007_v35  ;;  %v3760_v8 = vpop.eup %3759 }
 0x99b   :  { %3765 = vpow2.f32 %v2913_v56  ;;  %v2884_v26 = vmin.f32 %v2868_v53, 0.0  ;;  %v2930_v52 = vmul.f32 %v3760_v8, %v4007_v35 }
 0x99c   :  { %v2943_v25 = vmul.f32 -1.0, %v2927_v3 }
 0x99d   :  { %v3762_v63 = vpop.eup %3761  ;;  %v2915_v54 = vmul.f32 1.442695, %v2884_v26  ;;  %v2946_v24 = vmul.f32 -1.0, %v2930_v52 }
 0x99e   :  { %2969 = vadd.xlane.f32.xlu0 %v2943_v25  ;;  %v2928_v4 = vmul.f32 %v3762_v63, %v4007_v35 }
 0x99f   :  { %3767 = vpow2.f32 %v2915_v54 }
 0x9a0   :  { %v2944_v48 = vmul.f32 -1.0, %v2928_v4 }
 0x9a1   :  { %v3764_v45 = vpop.eup %3763 }
 0x9a2   :  { %2971 = vadd.xlane.f32.xlu1 %v2944_v48  ;;  %v2929_v42 = vmul.f32 %v3764_v45, %v4007_v35 }
 0x9a4   :  { %v2945_v9 = vmul.f32 -1.0, %v2929_v42 }
 0x9a5   :  { %v3766_v55 = vpop.eup %3765 }
 0x9a6   :  { %2973 = vadd.xlane.f32.xlu0 %v2945_v9  ;;  %2975 = vadd.xlane.f32.xlu1 %v2946_v24  ;;  %v2931_v18 = vmul.f32 %v3766_v55, %v4007_v35 }
 0x9a8   :  { %v2947_v31 = vmul.f32 -1.0, %v2931_v18 }
 0x9a9   :  { %v3768_v39 = vpop.eup %3767 }
 0x9aa   :  { %2977 = vadd.xlane.f32.xlu0 %v2947_v31  ;;  %v2932_v59 = vmul.f32 %v3768_v39, %v4007_v35 }
 0x9ac   :  { %v2948_v10 = vmul.f32 -1.0, %v2932_v59 }
 0x9ae   :  { %2979 = vadd.xlane.f32.xlu1 %v2948_v10 }
 0x9b5   :  { %v3106_v5 = vpop.trf.xlu0 }
 0x9b6   :  { %v3125_v14 = vrot.slane %v3106_v5, %v4088_v61 }
 0x9b8   :  { %v3126_v36 = vmul.f32 %v3125_v14, %v3089_v16 }
 0x9e6   :  { %v3230_v20 = vpop.trf.xlu1 }
 0x9e7   :  { %v3249_v13 = vrot.slane %v3230_v20, %v4088_v61 }
 0x9e9   :  { %v3250_v47 = vmul.f32 %v3249_v13, %v4413_v19 }
 0x9eb   :  { %v3251_v21 = vsub.f32 %v3126_v36, %v3250_v47 }
 0x9ed   :  { %v3252_v38 = vand.u32 2147483647, %v3251_v21 }
 0x9ef   :  { %v3253_v60 = vsel %vm108_vm3, %v3252_v38, 0.0 }
 0x9f0   :  { %3254 = vadd.xlane.f32.xlu0 %v3253_v60 }
 0xa01   :  { %v2950_v35 = vpop.xlane.xlu0 %2949 }
 0xa09   :  { %v2954_v17 = vpop.xlane.xlu0 %2953 }
 0xa0d   :  { %v2956_v1 = vpop.xlane.xlu0 %2955 }
 0xa11   :  { %v2958_v49 = vpop.xlane.xlu0 %2957 }
 0xa19   :  { %v2962_v57 = vpop.xlane.xlu0 %2961 }
 0xa1a   :  { %v2952_v28 = vpop.xlane.xlu1 %2951 }
 0xa1b   :  { %v2981_v58 = vadd.f32 %v2952_v28, %v2950_v35 }
 0xa1d   :  { %v2982_v11 = vadd.f32 %v2981_v58, %v2954_v17 }
 0xa1e   :  { %v2960_v29 = vpop.xlane.xlu1 %2959 }
 0xa1f   :  { %v2983_v40 = vadd.f32 %v2982_v11, %v2956_v1 }
 0xa21   :  { %v2984_v33 = vadd.f32 %v2983_v40, %v2958_v49 }
 0xa22   :  { %v2964_v27 = vpop.xlane.xlu1 %2963 }
 0xa23   :  { %v2985_v61 = vadd.f32 %v2984_v33, %v2960_v29  ;;  %v2966_v6 = vpop.xlane.xlu0 %2965 }
 0xa25   :  { %v2986_v32 = vadd.f32 %v2985_v61, %v2962_v57 }
 0xa27   :  { %v2987_v19 = vadd.f32 %v2986_v32, %v2964_v27  ;;  %v2968_v12 = vpop.xlane.xlu1 %2967 }
 0xa29   :  { %v2988_v22 = vadd.f32 %v2987_v19, %v2966_v6 }
 0xa2b   :  { %v2989_v30 = vadd.f32 %v2988_v22, %v2968_v12  ;;  %v2970_v46 = vpop.xlane.xlu0 %2969 }
 0xa2d   :  { %v2990_v41 = vadd.f32 %v2989_v30, %v2970_v46 }
 0xa2f   :  { %v2972_v0 = vpop.xlane.xlu1 %2971 }
 0xa30   :  { %v2991_v50 = vadd.f32 %v2990_v41, %v2972_v0 }
 0xa33   :  { %v2974_v34 = vpop.xlane.xlu0 %2973  ;;  %v2976_v44 = vpop.xlane.xlu1 %2975 }
 0xa34   :  { %v2992_v23 = vadd.f32 %v2991_v50, %v2974_v34 }
 0xa36   :  { %v2993_v37 = vadd.f32 %v2992_v23, %v2976_v44 }
 0xa37   :  { %v2978_v51 = vpop.xlane.xlu0 %2977 }
 0xa38   :  { %v2994_v43 = vadd.f32 %v2993_v37, %v2978_v51 }
 0xa3b   :  { %v2980_v62 = vpop.xlane.xlu1 %2979 }
 0xa3c   :  { %v2995_v56 = vadd.f32 %v2994_v43, %v2980_v62 }
 0xa3e   :  { %v2996_v53 = vrot.slane %v2995_v56, 4 }
 0xa40   :  { %v2997_v3 = vadd.f32 %v2996_v53, %v2995_v56 }
 0xa42   :  { %v2998_v26 = vrot.slane %v2997_v3, 2 }
 0xa44   :  { %v2999_v8 = vadd.f32 %v2998_v26, %v2997_v3 }
 0xa46   :  { %v3000_v25 = vrot.slane %v2999_v8, 1 }
 0xa48   :  { %v3001_v63 = vadd.f32 %v3000_v25, %v2999_v8 }
 0xa4a   :  { %v3002_v54 = vmul.f32 0.00024414063, %v3001_v63 }
 0xa4c   :  { %v3263_v4 = vadd.f32 %v3002_v54, %v4360_v15 }
 0xa4e   :  { %3266 = vst.msk [vmem:[#allocation3] sm:$0x1] %vm3265_vm6, %v3263_v4 }
 0xa4f   :  { %3780 = shalt.err (!%p3777_p4)
}
 0xa50   :  { %s3781_s22 = scalar_lea.hbm %s4498_s4, 16 }
 0xa51   :  { %p3782_p5 = scmp.ne.s32.totalorder %s4498_s4, %s3781_s22  ;;  %p3785_p6 = scmp.lt.u32.totalorder %s3781_s22, %s4498_s4 }
 0xa53   :  { %p3787_p7 = pnand %p3785_p6, %p3782_p5 }
 0xa55   :  { %3790 = shalt.err (!%p3787_p7)
}
 0xa56   :  { %3277 = dma.vmem_to_hbm [thread:$0]  %s3275_s17, 16, %s4498_s4, [#allocation4]  }
 0xa57   :  { %s3822_s28 = smov [#allocation5]  }
 0xa58   :  { %s3284_s29 = sshll.u32 %s3822_s28, 4  ;;  %s3285_s29 = int_to_ptr.vmem [resolvable:$true] %s3284_s29 }
 0xa59   :  { %s3791_s30 = scalar_lea.vmem %s3285_s29, 16  ;;  %s3795_s6 = scalar_lea.vmem %s3285_s29, 32 }
 0xa5a   :  { %p3792_p8 = scmp.ne.s32.totalorder %s3285_s29, %s3791_s30  ;;  %p3796_p9 = scmp.lt.s32.totalorder %s3285_s29, %s3285_s29 }
 0xa5b   :  { %p3797_p10 = scmp.lt.s32.totalorder %s3795_s6, %s3791_s30 }
 0xa5d   :  { %p3798_p11 = por %p3797_p10, %p3796_p9 }
 0xa5f   :  { %p3799_p12 = pnand %p3798_p11, %p3792_p8 }
 0xa7d   :  { %v3255_v15 = vpop.xlane.xlu0 %3254 }
 0xa7e   :  { %v3256_v48 = vrot.slane %v3255_v15, 4 }
 0xa80   :  { %v3257_v52 = vadd.f32 %v3256_v48, %v3255_v15 }
 0xa82   :  { %v3258_v45 = vrot.slane %v3257_v52, 2 }
 0xa84   :  { %v3259_v42 = vadd.f32 %v3258_v45, %v3257_v52 }
 0xa86   :  { %v3260_v9 = vrot.slane %v3259_v42, 1 }
 0xa88   :  { %v3261_v24 = vadd.f32 %v3260_v9, %v3259_v42 }
 0xa8a   :  { %v3262_v55 = vmul.f32 0.015625, %v3261_v24 }
 0xa8c   :  { %v3264_v18 = vadd.f32 %v3262_v55, %v4410_v2 }
 0xa8e   :  { %3267 = vst.msk [vmem:[#allocation5] sm:$0x1] %vm3265_vm6, %v3264_v18 }
 0xa8f   :  { %3802 = shalt.err (!%p3799_p12)
}
 0xa90   :  { %s3803_s8 = scalar_lea.hbm %s4499_s5, 16 }
 0xa91   :  { %p3804_p13 = scmp.ne.s32.totalorder %s4499_s5, %s3803_s8  ;;  %p3807_p0 = scmp.lt.u32.totalorder %s3803_s8, %s4499_s5 }
 0xa93   :  { %p3809_p1 = pnand %p3807_p0, %p3804_p13 }
 0xa95   :  { %3812 = shalt.err (!%p3809_p1)
}
 0xa96   :  { %3287 = dma.vmem_to_hbm [thread:$0]  %s3285_s29, 16, %s4499_s5, [#allocation6]  }
 0xa97   :  { %3813 = dma.done.wait [#allocation4], 16  }
 0xa98   :  { %3814 = vsyncadd [#allocation4], 4294967280 }
 0xa99   :  { %3815 = dma.done.wait [#allocation6], 16  }
 0xa9a   :  { %3816 = vsyncadd [#allocation6], 4294967280 }
 0xa9b   :  { %3294 = vsyncpa [#allocation4], 1 }
 0xa9c   :  { %3295 = vsyncpa [#allocation6], 1 }

</bundles_post_ra>
